<compile_context>
chip_gen: v7x
topology: tpu7x:2x2x1
jax: 0.10.0
libtpu: 0.0.40
codegen_flags: <defaults>
</compile_context>

<pallas_src>
import functools
import math

import jax
import jax.numpy as jnp
from jax.experimental import pallas as pl
from jax.experimental.pallas import tpu as pltpu

_LOG2_E = 1.4426950408889634


def _rotate_half(t, dh):
    # [t1, t2] -> [t2, t1]; the rotate_half sign lives in the signed-sin table.
    if dh % 128 == 0:
        # lane-aligned head_dim: pure XLU rotate, off the MXU/VPU critical path.
        return pltpu.roll(t, shift=dh // 2, axis=t.ndim - 1)
    # TODO(synk): pad head_dim to a multiple of 128 for production configs.
    return jnp.concatenate([t[..., dh // 2:], t[..., :dh // 2]], axis=-1)


def qkv_rope_kernel(num_heads, q_scale,
                    x_ref, cos_ref, sin_ref,
                    wq_ref, bq_ref, wk_ref, bk_ref, wv_ref, bv_ref,
                    q_ref, k_ref, v_ref):
    """Q/K/V projections + rotary embeddings, hoisted out of the attention grid.

    Runs once per (batch, seq-tile). The attention kernel then streams the
    pre-projected bf16 (H, tile, dh) tensors instead of re-projecting x for
    every query tile.
    """
    ts, D = x_ref.shape
    H = num_heads
    dh = D // H

    xb = x_ref[...]                                     # bf16 at the call boundary
    q = jnp.dot(xb, wq_ref[...], preferred_element_type=jnp.float32) + bq_ref[...]
    k = jnp.dot(xb, wk_ref[...], preferred_element_type=jnp.float32) + bk_ref[...]
    v = jnp.dot(xb, wv_ref[...], preferred_element_type=jnp.float32) + bv_ref[...]

    cos = cos_ref[...]                                  # (ts, dh) broadcast over heads
    sin = sin_ref[...]                                  # signed sin (rotate-half sign folded)

    # TODO(synk): switch to pltpu.einshape once dh is lane-aligned (avoids relayouts).
    qh = jnp.transpose(q.reshape(ts, H, dh), (1, 0, 2))  # (H, ts, dh)
    kh = jnp.transpose(k.reshape(ts, H, dh), (1, 0, 2))
    vh = jnp.transpose(v.reshape(ts, H, dh), (1, 0, 2))

    qh = qh * cos + _rotate_half(qh, dh) * sin
    kh = kh * cos + _rotate_half(kh, dh) * sin

    # Fold 1/sqrt(dh) * log2(e) into q so the attention kernel can use exp2.
    q_ref[...] = (qh * q_scale).astype(jnp.bfloat16)
    k_ref[...] = kh.astype(jnp.bfloat16)
    v_ref[...] = vh.astype(jnp.bfloat16)


def attn_core_kernel(q_ref, k_ref, v_ref, wo_ref, bo_ref, o_ref,
                     m_scr, l_scr, acc_scr):
    """Flash-style non-causal multi-head attention + output projection."""
    j = pl.program_id(2)
    H, tq, dh = q_ref.shape
    D = o_ref.shape[-1]

    @pl.when(j == 0)
    def _init():
        m_scr[...] = jnp.full((H, tq, 1), -jnp.inf, dtype=jnp.float32)
        l_scr[...] = jnp.zeros((H, tq, 1), dtype=jnp.float32)
        acc_scr[...] = jnp.zeros((H, tq, dh), dtype=jnp.float32)

    # Head-batched scores; q already carries 1/sqrt(dh) * log2(e), so exp2 below
    # reproduces the exact softmax.
    s = jnp.einsum('hqd,hkd->hqk', q_ref[...], k_ref[...],
                   preferred_element_type=jnp.float32)           # (H, tq, tkv)

    m_prev = m_scr[...]
    m_new = jnp.maximum(m_prev, jnp.max(s, axis=-1, keepdims=True))
    alpha = jnp.exp2(m_prev - m_new)
    p = jnp.exp2(s - m_new)
    l_scr[...] = alpha * l_scr[...] + jnp.sum(p, axis=-1, keepdims=True)
    acc_scr[...] = alpha * acc_scr[...] + jnp.einsum(
        'hqk,hkd->hqd', p.astype(jnp.bfloat16), v_ref[...],
        preferred_element_type=jnp.float32)
    m_scr[...] = m_new

    @pl.when(j == pl.num_programs(2) - 1)
    def _finalize():
        # Exact reciprocal (EUP, off the critical slot) for closer f32-reference parity.
        out_h = acc_scr[...] * pl.reciprocal(l_scr[...], approx=False)
        attn = jnp.transpose(out_h, (1, 0, 2)).reshape(tq, D)    # merge heads
        y = jnp.dot(attn.astype(jnp.bfloat16), wo_ref[...],
                    preferred_element_type=jnp.float32) + bo_ref[...]
        o_ref[...] = y.astype(o_ref.dtype)


def _vmem_limit_bytes(estimate):
    # Per-chip cap with ~20% headroom for Mosaic internal scratch and pipeline
    # bookkeeping (v7x: 64 MiB/TC physical; v5e/v6e: 128 MiB).
    try:
        cap = int(pltpu.get_tpu_info().vmem_capacity_bytes)
    except Exception:
        cap = 128 * 2 ** 20
    return int(min(int(0.8 * cap), max(32 * 2 ** 20, 2 * int(estimate))))


def _const_spec(shape, index_map, single_buffer):
    # Blocks whose index never changes across the grid: single-buffer them to halve
    # resident VMEM (falls back to default double-buffering if unsupported).
    if single_buffer:
        try:
            return pl.BlockSpec(shape, index_map, pipeline_mode=pl.Buffered(1))
        except TypeError:
            pass
    return pl.BlockSpec(shape, index_map)


def custom_attention(x, params, num_heads, *, q_tile=256, kv_tile=512,
                     proj_tile=256, rope_theta=10000.0,
                     out_dtype=jnp.float32, single_buffer_consts=True):
    B, S, D = x.shape
    assert D % num_heads == 0
    H = num_heads
    dh = D // H
    tq = min(q_tile, S)
    tkv = min(kv_tile, S)
    ts = min(proj_tile, S)
    assert S % tq == 0 and S % tkv == 0 and S % ts == 0

    # ---- rotary tables (xformers RotaryEmbedding, rotate_half), host-side glue ----
    inv_freq = 1.0 / (rope_theta ** (jnp.arange(0, dh, 2, dtype=jnp.float32) / dh))
    t = jnp.arange(S, dtype=jnp.float32)
    freqs = jnp.einsum("i,j->ij", t, inv_freq)          # (S, dh/2)
    emb = jnp.concatenate([freqs, freqs], axis=-1)      # (S, dh)
    cos = jnp.cos(emb)
    sin = jnp.sin(emb)
    # rotate_half(x) = [-x2, x1]; the roll/concat produces [x2, x1] -> fold sign into sin.
    sin_signed = jnp.concatenate([-sin[:, :dh // 2], sin[:, dh // 2:]], axis=-1)

    # bf16 matmul operands / streamed activations (f32 accumulation in-kernel).
    x_bf = x.astype(jnp.bfloat16)
    wq = params["wq"].astype(jnp.bfloat16)
    wk = params["wk"].astype(jnp.bfloat16)
    wv = params["wv"].astype(jnp.bfloat16)
    wo = params["wo"].astype(jnp.bfloat16)
    bq, bk, bv, bo = params["bq"], params["bk"], params["bv"], params["bo"]

    q_scale = _LOG2_E / math.sqrt(dh)
    nbuf = 1 if single_buffer_consts else 2

    def cspec(arr):
        nd = arr.ndim
        return _const_spec(arr.shape, lambda *idx, _nd=nd: (0,) * _nd,
                           single_buffer_consts)

    # -------- kernel 1: Q/K/V projection + RoPE, grid over (batch, seq tiles) --------
    est_proj = (2 * ts * D * 2                        # x blocks (bf16, double-buffered)
                + 2 * 2 * ts * dh * 4                 # cos / signed-sin blocks
                + nbuf * 3 * (D * D * 2 + D * 4)      # wq/wk/wv + biases
                + 2 * 3 * H * ts * dh * 2             # q/k/v output blocks (bf16)
                + 8 * ts * D * 4)                     # in-kernel intermediates
    q, k, v = pl.pallas_call(
        functools.partial(qkv_rope_kernel, H, q_scale),
        out_shape=(jax.ShapeDtypeStruct((B, H, S, dh), jnp.bfloat16),
                   jax.ShapeDtypeStruct((B, H, S, dh), jnp.bfloat16),
                   jax.ShapeDtypeStruct((B, H, S, dh), jnp.bfloat16)),
        grid=(B, S // ts),
        in_specs=[
            pl.BlockSpec((None, ts, D), lambda b, i: (b, i, 0)),   # x rows (bf16)
            pl.BlockSpec((ts, dh), lambda b, i: (i, 0)),           # cos
            pl.BlockSpec((ts, dh), lambda b, i: (i, 0)),           # signed sin
            cspec(wq), cspec(bq), cspec(wk), cspec(bk), cspec(wv), cspec(bv),
        ],
        out_specs=(
            pl.BlockSpec((None, H, ts, dh), lambda b, i: (b, 0, i, 0)),
            pl.BlockSpec((None, H, ts, dh), lambda b, i: (b, 0, i, 0)),
            pl.BlockSpec((None, H, ts, dh), lambda b, i: (b, 0, i, 0)),
        ),
        compiler_params=pltpu.CompilerParams(
            dimension_semantics=("parallel", "parallel"),
            vmem_limit_bytes=_vmem_limit_bytes(est_proj),
        ),
    )(x_bf, cos, sin_signed, wq, bq, wk, bk, wv, bv)

    # -------- kernel 2: flash attention core + output projection --------
    est_attn = (2 * H * tq * dh * 2                   # q blocks (bf16)
                + 2 * 2 * H * tkv * dh * 2            # k/v blocks (bf16)
                + nbuf * (D * D * 2 + D * 4)          # wo + bo
                + 2 * tq * D * 4                      # output blocks
                + H * tq * (dh * 4 + 8)               # m/l/acc scratch
                + 4 * H * tq * tkv * 4 + 2 * tq * D * 4)   # intermediates
    out = pl.pallas_call(
        attn_core_kernel,
        out_shape=jax.ShapeDtypeStruct((B, S, D), out_dtype),
        grid=(B, S // tq, S // tkv),
        in_specs=[
            pl.BlockSpec((None, H, tq, dh), lambda b, i, j: (b, 0, i, 0)),
            pl.BlockSpec((None, H, tkv, dh), lambda b, i, j: (b, 0, j, 0)),
            pl.BlockSpec((None, H, tkv, dh), lambda b, i, j: (b, 0, j, 0)),
            cspec(wo), cspec(bo),
        ],
        out_specs=pl.BlockSpec((None, tq, D), lambda b, i, j: (b, i, 0)),
        scratch_shapes=[
            pltpu.VMEM((H, tq, 1), jnp.float32),      # running max (log2 domain)
            pltpu.VMEM((H, tq, 1), jnp.float32),      # running softmax denominator
            pltpu.VMEM((H, tq, dh), jnp.float32),     # output accumulator
        ],
        compiler_params=pltpu.CompilerParams(
            dimension_semantics=("parallel", "parallel", "arbitrary"),
            vmem_limit_bytes=_vmem_limit_bytes(est_attn),
        ),
    )(q, k, v, wo, bo)
    return out


def init_params(key, d_model):
    ks = jax.random.split(key, 8)
    s = 0.02
    f32 = jnp.float32
    # Linear weights stored as (in_features, out_features): y = x @ W + b.
    return {
        "wq": s * jax.random.normal(ks[0], (d_model, d_model), f32),
        "bq": s * jax.random.normal(ks[1], (1, d_model), f32),
        "wk": s * jax.random.normal(ks[2], (d_model, d_model), f32),
        "bk": s * jax.random.normal(ks[3], (1, d_model), f32),
        "wv": s * jax.random.normal(ks[4], (d_model, d_model), f32),
        "bv": s * jax.random.normal(ks[5], (1, d_model), f32),
        "wo": s * jax.random.normal(ks[6], (d_model, d_model), f32),
        "bo": s * jax.random.normal(ks[7], (1, d_model), f32),
    }


if __name__ == "__main__":
    # Small shapes consistent with the module: batch=2, context_size=8, d_model=32,
    # num_heads=4 (head_dim=8).
    B, S, D, H = 2, 8, 32, 4

    key = jax.random.PRNGKey(0)
    k_x, k_p = jax.random.split(key)
    x = jax.random.normal(k_x, (B, S, D), jnp.float32)
    params = init_params(k_p, D)

    try:
        out = custom_attention(x, params, num_heads=H)
    except Exception:
        # Conservative fallback: default double-buffering for the constant blocks.
        out = custom_attention(x, params, num_heads=H, single_buffer_consts=False)
    out = jax.block_until_ready(out)
    assert out.shape == (B, S, D)
    assert bool(jnp.all(jnp.isfinite(out)))
    print("KERNEL_OK")
</pallas_src>

<mosaic_0001>
module attributes {stable_mosaic.version = 11 : i64} {
  func.func @qkv_rope_kernel(%arg0: i32, %arg1: i32, %arg2: memref<1x8x32xbf16, #tpu.memory_space<vmem>>, %arg3: memref<8x8xf32, #tpu.memory_space<vmem>>, %arg4: memref<8x8xf32, #tpu.memory_space<vmem>>, %arg5: memref<32x32xbf16, #tpu.memory_space<vmem>>, %arg6: memref<1x32xf32, #tpu.memory_space<vmem>>, %arg7: memref<32x32xbf16, #tpu.memory_space<vmem>>, %arg8: memref<1x32xf32, #tpu.memory_space<vmem>>, %arg9: memref<32x32xbf16, #tpu.memory_space<vmem>>, %arg10: memref<1x32xf32, #tpu.memory_space<vmem>>, %arg11: memref<1x4x8x8xbf16, #tpu.memory_space<vmem>>, %arg12: memref<1x4x8x8xbf16, #tpu.memory_space<vmem>>, %arg13: memref<1x4x8x8xbf16, #tpu.memory_space<vmem>>) attributes {dimension_semantics = [#tpu.dimension_semantics<parallel>, #tpu.dimension_semantics<parallel>], iteration_bounds = array<i64: 2, 1>, scalar_prefetch = 0 : i64, scratch_operands = 0 : i64, tpu.core_type = #tpu.core_type<tc>, window_params = [{transform_indices = @transform_0, window_bounds = array<i64: 1, 8, 32>}, {transform_indices = @transform_1, window_bounds = array<i64: 8, 8>}, {transform_indices = @transform_2, window_bounds = array<i64: 8, 8>}, {pipeline_mode = #tpu.pipeline_mode<synchronous>, transform_indices = @transform_3, window_bounds = array<i64: 32, 32>}, {pipeline_mode = #tpu.pipeline_mode<synchronous>, transform_indices = @transform_4, window_bounds = array<i64: 1, 32>}, {pipeline_mode = #tpu.pipeline_mode<synchronous>, transform_indices = @transform_5, window_bounds = array<i64: 32, 32>}, {pipeline_mode = #tpu.pipeline_mode<synchronous>, transform_indices = @transform_6, window_bounds = array<i64: 1, 32>}, {pipeline_mode = #tpu.pipeline_mode<synchronous>, transform_indices = @transform_7, window_bounds = array<i64: 32, 32>}, {pipeline_mode = #tpu.pipeline_mode<synchronous>, transform_indices = @transform_8, window_bounds = array<i64: 1, 32>}, {transform_indices = @transform_9, window_bounds = array<i64: 1, 4, 8, 8>}, {transform_indices = @transform_10, window_bounds = array<i64: 1, 4, 8, 8>}, {transform_indices = @transform_11, window_bounds = array<i64: 1, 4, 8, 8>}]} {
    %c0 = arith.constant 0 : index
    %c0_0 = arith.constant 0 : index
    %c0_1 = arith.constant 0 : index
    %0 = vector.load %arg2[%c0, %c0_0, %c0_1] : memref<1x8x32xbf16, #tpu.memory_space<vmem>>, vector<1x8x32xbf16>
    %1 = vector.shape_cast %0 : vector<1x8x32xbf16> to vector<8x32xbf16>
    %c0_2 = arith.constant 0 : index
    %c0_3 = arith.constant 0 : index
    %2 = vector.load %arg5[%c0_2, %c0_3] : memref<32x32xbf16, #tpu.memory_space<vmem>>, vector<32x32xbf16>
    %cst = arith.constant dense<0.000000e+00> : vector<8x32xf32>
    %3 = tpu.matmul %1, %2, %cst {dimension_numbers = #tpu.dot_dimension_numbers<[1], [0], [0], [1], [0, 0, 1, 1], [], []>} : vector<8x32xbf16>, vector<32x32xbf16>, vector<8x32xf32> -> vector<8x32xf32>
    %c0_4 = arith.constant 0 : index
    %c0_5 = arith.constant 0 : index
    %4 = vector.load %arg6[%c0_4, %c0_5] : memref<1x32xf32, #tpu.memory_space<vmem>>, vector<1x32xf32>
    %5 = vector.broadcast %4 : vector<1x32xf32> to vector<8x32xf32>
    %6 = arith.addf %3, %5 : vector<8x32xf32>
    %c0_6 = arith.constant 0 : index
    %c0_7 = arith.constant 0 : index
    %7 = vector.load %arg7[%c0_6, %c0_7] : memref<32x32xbf16, #tpu.memory_space<vmem>>, vector<32x32xbf16>
    %cst_8 = arith.constant dense<0.000000e+00> : vector<8x32xf32>
    %8 = tpu.matmul %1, %7, %cst_8 {dimension_numbers = #tpu.dot_dimension_numbers<[1], [0], [0], [1], [0, 0, 1, 1], [], []>} : vector<8x32xbf16>, vector<32x32xbf16>, vector<8x32xf32> -> vector<8x32xf32>
    %c0_9 = arith.constant 0 : index
    %c0_10 = arith.constant 0 : index
    %9 = vector.load %arg8[%c0_9, %c0_10] : memref<1x32xf32, #tpu.memory_space<vmem>>, vector<1x32xf32>
    %10 = vector.broadcast %9 : vector<1x32xf32> to vector<8x32xf32>
    %11 = arith.addf %8, %10 : vector<8x32xf32>
    %c0_11 = arith.constant 0 : index
    %c0_12 = arith.constant 0 : index
    %12 = vector.load %arg9[%c0_11, %c0_12] : memref<32x32xbf16, #tpu.memory_space<vmem>>, vector<32x32xbf16>
    %cst_13 = arith.constant dense<0.000000e+00> : vector<8x32xf32>
    %13 = tpu.matmul %1, %12, %cst_13 {dimension_numbers = #tpu.dot_dimension_numbers<[1], [0], [0], [1], [0, 0, 1, 1], [], []>} : vector<8x32xbf16>, vector<32x32xbf16>, vector<8x32xf32> -> vector<8x32xf32>
    %c0_14 = arith.constant 0 : index
    %c0_15 = arith.constant 0 : index
    %14 = vector.load %arg10[%c0_14, %c0_15] : memref<1x32xf32, #tpu.memory_space<vmem>>, vector<1x32xf32>
    %15 = vector.broadcast %14 : vector<1x32xf32> to vector<8x32xf32>
    %16 = arith.addf %13, %15 : vector<8x32xf32>
    %c0_16 = arith.constant 0 : index
    %c0_17 = arith.constant 0 : index
    %17 = vector.load %arg3[%c0_16, %c0_17] : memref<8x8xf32, #tpu.memory_space<vmem>>, vector<8x8xf32>
    %c0_18 = arith.constant 0 : index
    %c0_19 = arith.constant 0 : index
    %18 = vector.load %arg4[%c0_18, %c0_19] : memref<8x8xf32, #tpu.memory_space<vmem>>, vector<8x8xf32>
    %19 = vector.shape_cast %6 : vector<8x32xf32> to vector<8x4x8xf32>
    %20 = tpu.transpose %19, [1, 0, 2] : vector<8x4x8xf32> -> vector<4x8x8xf32>
    %21 = vector.shape_cast %11 : vector<8x32xf32> to vector<8x4x8xf32>
    %22 = tpu.transpose %21, [1, 0, 2] : vector<8x4x8xf32> -> vector<4x8x8xf32>
    %23 = vector.shape_cast %16 : vector<8x32xf32> to vector<8x4x8xf32>
    %24 = tpu.transpose %23, [1, 0, 2] : vector<8x4x8xf32> -> vector<4x8x8xf32>
    %25 = vector.shape_cast %17 : vector<8x8xf32> to vector<1x8x8xf32>
    %26 = vector.broadcast %25 : vector<1x8x8xf32> to vector<4x8x8xf32>
    %27 = arith.mulf %20, %26 : vector<4x8x8xf32>
    %28 = vector.extract_strided_slice %20 {offsets = [0, 0, 4], sizes = [4, 8, 4], strides = [1, 1, 1]} : vector<4x8x8xf32> to vector<4x8x4xf32>
    %29 = vector.extract_strided_slice %20 {offsets = [0, 0, 0], sizes = [4, 8, 4], strides = [1, 1, 1]} : vector<4x8x8xf32> to vector<4x8x4xf32>
    %30 = tpu.concatenate %28, %29 in 2 : vector<4x8x4xf32>, vector<4x8x4xf32> -> vector<4x8x8xf32>
    %31 = vector.shape_cast %18 : vector<8x8xf32> to vector<1x8x8xf32>
    %32 = vector.broadcast %31 : vector<1x8x8xf32> to vector<4x8x8xf32>
    %33 = arith.mulf %30, %32 : vector<4x8x8xf32>
    %34 = arith.addf %27, %33 : vector<4x8x8xf32>
    %35 = vector.shape_cast %17 : vector<8x8xf32> to vector<1x8x8xf32>
    %36 = vector.broadcast %35 : vector<1x8x8xf32> to vector<4x8x8xf32>
    %37 = arith.mulf %22, %36 : vector<4x8x8xf32>
    %38 = vector.extract_strided_slice %22 {offsets = [0, 0, 4], sizes = [4, 8, 4], strides = [1, 1, 1]} : vector<4x8x8xf32> to vector<4x8x4xf32>
    %39 = vector.extract_strided_slice %22 {offsets = [0, 0, 0], sizes = [4, 8, 4], strides = [1, 1, 1]} : vector<4x8x8xf32> to vector<4x8x4xf32>
    %40 = tpu.concatenate %38, %39 in 2 : vector<4x8x4xf32>, vector<4x8x4xf32> -> vector<4x8x8xf32>
    %41 = vector.shape_cast %18 : vector<8x8xf32> to vector<1x8x8xf32>
    %42 = vector.broadcast %41 : vector<1x8x8xf32> to vector<4x8x8xf32>
    %43 = arith.mulf %40, %42 : vector<4x8x8xf32>
    %44 = arith.addf %37, %43 : vector<4x8x8xf32>
    %cst_20 = arith.constant 0.510069728 : f32
    %45 = vector.broadcast %cst_20 : f32 to vector<4x8x8xf32>
    %46 = arith.mulf %34, %45 : vector<4x8x8xf32>
    %47 = arith.truncf %46 : vector<4x8x8xf32> to vector<4x8x8xbf16>
    %c0_21 = arith.constant 0 : index
    %c0_22 = arith.constant 0 : index
    %c0_23 = arith.constant 0 : index
    %c0_24 = arith.constant 0 : index
    %48 = vector.load %arg11[%c0_21, %c0_22, %c0_23, %c0_24] : memref<1x4x8x8xbf16, #tpu.memory_space<vmem>>, vector<1x4x8x8xbf16>
    %49 = vector.shape_cast %48 : vector<1x4x8x8xbf16> to vector<4x8x8xbf16>
    %50 = vector.shape_cast %47 : vector<4x8x8xbf16> to vector<1x4x8x8xbf16>
    tpu.vector_store %arg11[%c0_21, %c0_22, %c0_23, %c0_24], %50 {strides = array<i32>} : memref<1x4x8x8xbf16, #tpu.memory_space<vmem>>, vector<1x4x8x8xbf16>,
    %51 = arith.truncf %44 : vector<4x8x8xf32> to vector<4x8x8xbf16>
    %c0_25 = arith.constant 0 : index
    %c0_26 = arith.constant 0 : index
    %c0_27 = arith.constant 0 : index
    %c0_28 = arith.constant 0 : index
    %52 = vector.load %arg12[%c0_25, %c0_26, %c0_27, %c0_28] : memref<1x4x8x8xbf16, #tpu.memory_space<vmem>>, vector<1x4x8x8xbf16>
    %53 = vector.shape_cast %52 : vector<1x4x8x8xbf16> to vector<4x8x8xbf16>
    %54 = vector.shape_cast %51 : vector<4x8x8xbf16> to vector<1x4x8x8xbf16>
    tpu.vector_store %arg12[%c0_25, %c0_26, %c0_27, %c0_28], %54 {strides = array<i32>} : memref<1x4x8x8xbf16, #tpu.memory_space<vmem>>, vector<1x4x8x8xbf16>,
    %55 = arith.truncf %24 : vector<4x8x8xf32> to vector<4x8x8xbf16>
    %c0_29 = arith.constant 0 : index
    %c0_30 = arith.constant 0 : index
    %c0_31 = arith.constant 0 : index
    %c0_32 = arith.constant 0 : index
    %56 = vector.load %arg13[%c0_29, %c0_30, %c0_31, %c0_32] : memref<1x4x8x8xbf16, #tpu.memory_space<vmem>>, vector<1x4x8x8xbf16>
    %57 = vector.shape_cast %56 : vector<1x4x8x8xbf16> to vector<4x8x8xbf16>
    %58 = vector.shape_cast %55 : vector<4x8x8xbf16> to vector<1x4x8x8xbf16>
    tpu.vector_store %arg13[%c0_29, %c0_30, %c0_31, %c0_32], %58 {strides = array<i32>} : memref<1x4x8x8xbf16, #tpu.memory_space<vmem>>, vector<1x4x8x8xbf16>,
    return
  }
  func.func @transform_0(%arg0: i32, %arg1: i32) -> (i32, i32, i32) {
    %c0_i32 = arith.constant 0 : i32
    %c0_i32_0 = arith.constant 0 : i32
    return %arg0, %arg1, %c0_i32 : i32, i32, i32
  }
  func.func @transform_1(%arg0: i32, %arg1: i32) -> (i32, i32) {
    %c0_i32 = arith.constant 0 : i32
    %c0_i32_0 = arith.constant 0 : i32
    return %arg1, %c0_i32 : i32, i32
  }
  func.func @transform_2(%arg0: i32, %arg1: i32) -> (i32, i32) {
    %c0_i32 = arith.constant 0 : i32
    %c0_i32_0 = arith.constant 0 : i32
    return %arg1, %c0_i32 : i32, i32
  }
  func.func @transform_3(%arg0: i32, %arg1: i32) -> (i32, i32) {
    %c0_i32 = arith.constant 0 : i32
    %c0_i32_0 = arith.constant 0 : i32
    %c0_i32_1 = arith.constant 0 : i32
    return %c0_i32, %c0_i32_0 : i32, i32
  }
  func.func @transform_4(%arg0: i32, %arg1: i32) -> (i32, i32) {
    %c0_i32 = arith.constant 0 : i32
    %c0_i32_0 = arith.constant 0 : i32
    %c0_i32_1 = arith.constant 0 : i32
    return %c0_i32, %c0_i32_0 : i32, i32
  }
  func.func @transform_5(%arg0: i32, %arg1: i32) -> (i32, i32) {
    %c0_i32 = arith.constant 0 : i32
    %c0_i32_0 = arith.constant 0 : i32
    %c0_i32_1 = arith.constant 0 : i32
    return %c0_i32, %c0_i32_0 : i32, i32
  }
  func.func @transform_6(%arg0: i32, %arg1: i32) -> (i32, i32) {
    %c0_i32 = arith.constant 0 : i32
    %c0_i32_0 = arith.constant 0 : i32
    %c0_i32_1 = arith.constant 0 : i32
    return %c0_i32, %c0_i32_0 : i32, i32
  }
  func.func @transform_7(%arg0: i32, %arg1: i32) -> (i32, i32) {
    %c0_i32 = arith.constant 0 : i32
    %c0_i32_0 = arith.constant 0 : i32
    %c0_i32_1 = arith.constant 0 : i32
    return %c0_i32, %c0_i32_0 : i32, i32
  }
  func.func @transform_8(%arg0: i32, %arg1: i32) -> (i32, i32) {
    %c0_i32 = arith.constant 0 : i32
    %c0_i32_0 = arith.constant 0 : i32
    %c0_i32_1 = arith.constant 0 : i32
    return %c0_i32, %c0_i32_0 : i32, i32
  }
  func.func @transform_9(%arg0: i32, %arg1: i32) -> (i32, i32, i32, i32) {
    %c0_i32 = arith.constant 0 : i32
    %c0_i32_0 = arith.constant 0 : i32
    %c0_i32_1 = arith.constant 0 : i32
    return %arg0, %c0_i32, %arg1, %c0_i32_0 : i32, i32, i32, i32
  }
  func.func @transform_10(%arg0: i32, %arg1: i32) -> (i32, i32, i32, i32) {
    %c0_i32 = arith.constant 0 : i32
    %c0_i32_0 = arith.constant 0 : i32
    %c0_i32_1 = arith.constant 0 : i32
    return %arg0, %c0_i32, %arg1, %c0_i32_0 : i32, i32, i32, i32
  }
  func.func @transform_11(%arg0: i32, %arg1: i32) -> (i32, i32, i32, i32) {
    %c0_i32 = arith.constant 0 : i32
    %c0_i32_0 = arith.constant 0 : i32
    %c0_i32_1 = arith.constant 0 : i32
    return %arg0, %c0_i32, %arg1, %c0_i32_0 : i32, i32, i32, i32
  }
}

module attributes {stable_mosaic.version = 11 : i64} {
  func.func @qkv_rope_kernel(%arg0: i32, %arg1: i32, %arg2: memref<1x8x32xbf16, #tpu.memory_space<vmem>>, %arg3: memref<8x8xf32, #tpu.memory_space<vmem>>, %arg4: memref<8x8xf32, #tpu.memory_space<vmem>>, %arg5: memref<32x32xbf16, #tpu.memory_space<vmem>>, %arg6: memref<1x32xf32, #tpu.memory_space<vmem>>, %arg7: memref<32x32xbf16, #tpu.memory_space<vmem>>, %arg8: memref<1x32xf32, #tpu.memory_space<vmem>>, %arg9: memref<32x32xbf16, #tpu.memory_space<vmem>>, %arg10: memref<1x32xf32, #tpu.memory_space<vmem>>, %arg11: memref<1x4x8x8xbf16, #tpu.memory_space<vmem>>, %arg12: memref<1x4x8x8xbf16, #tpu.memory_space<vmem>>, %arg13: memref<1x4x8x8xbf16, #tpu.memory_space<vmem>>) attributes {dimension_semantics = [#tpu.dimension_semantics<parallel>, #tpu.dimension_semantics<parallel>], iteration_bounds = array<i64: 2, 1>, scalar_prefetch = 0 : i64, scratch_operands = 0 : i64, tpu.core_type = #tpu.core_type<tc>, window_params = [{transform_indices = @transform_0, window_bounds = array<i64: 1, 8, 32>}, {transform_indices = @transform_1, window_bounds = array<i64: 8, 8>}, {transform_indices = @transform_2, window_bounds = array<i64: 8, 8>}, {pipeline_mode = #tpu.pipeline_mode<synchronous>, transform_indices = @transform_3, window_bounds = array<i64: 32, 32>}, {pipeline_mode = #tpu.pipeline_mode<synchronous>, transform_indices = @transform_4, window_bounds = array<i64: 1, 32>}, {pipeline_mode = #tpu.pipeline_mode<synchronous>, transform_indices = @transform_5, window_bounds = array<i64: 32, 32>}, {pipeline_mode = #tpu.pipeline_mode<synchronous>, transform_indices = @transform_6, window_bounds = array<i64: 1, 32>}, {pipeline_mode = #tpu.pipeline_mode<synchronous>, transform_indices = @transform_7, window_bounds = array<i64: 32, 32>}, {pipeline_mode = #tpu.pipeline_mode<synchronous>, transform_indices = @transform_8, window_bounds = array<i64: 1, 32>}, {transform_indices = @transform_9, window_bounds = array<i64: 1, 4, 8, 8>}, {transform_indices = @transform_10, window_bounds = array<i64: 1, 4, 8, 8>}, {transform_indices = @transform_11, window_bounds = array<i64: 1, 4, 8, 8>}]} {
    %c0 = arith.constant 0 : index
    %c0_0 = arith.constant 0 : index
    %c0_1 = arith.constant 0 : index
    %0 = vector.load %arg2[%c0, %c0_0, %c0_1] : memref<1x8x32xbf16, #tpu.memory_space<vmem>>, vector<1x8x32xbf16>
    %1 = vector.shape_cast %0 : vector<1x8x32xbf16> to vector<8x32xbf16>
    %c0_2 = arith.constant 0 : index
    %c0_3 = arith.constant 0 : index
    %2 = vector.load %arg5[%c0_2, %c0_3] : memref<32x32xbf16, #tpu.memory_space<vmem>>, vector<32x32xbf16>
    %cst = arith.constant dense<0.000000e+00> : vector<8x32xf32>
    %3 = tpu.matmul %1, %2, %cst {dimension_numbers = #tpu.dot_dimension_numbers<[1], [0], [0], [1], [0, 0, 1, 1], [], []>} : vector<8x32xbf16>, vector<32x32xbf16>, vector<8x32xf32> -> vector<8x32xf32>
    %c0_4 = arith.constant 0 : index
    %c0_5 = arith.constant 0 : index
    %4 = vector.load %arg6[%c0_4, %c0_5] : memref<1x32xf32, #tpu.memory_space<vmem>>, vector<1x32xf32>
    %5 = vector.broadcast %4 : vector<1x32xf32> to vector<8x32xf32>
    %6 = arith.addf %3, %5 : vector<8x32xf32>
    %c0_6 = arith.constant 0 : index
    %c0_7 = arith.constant 0 : index
    %7 = vector.load %arg7[%c0_6, %c0_7] : memref<32x32xbf16, #tpu.memory_space<vmem>>, vector<32x32xbf16>
    %cst_8 = arith.constant dense<0.000000e+00> : vector<8x32xf32>
    %8 = tpu.matmul %1, %7, %cst_8 {dimension_numbers = #tpu.dot_dimension_numbers<[1], [0], [0], [1], [0, 0, 1, 1], [], []>} : vector<8x32xbf16>, vector<32x32xbf16>, vector<8x32xf32> -> vector<8x32xf32>
    %c0_9 = arith.constant 0 : index
    %c0_10 = arith.constant 0 : index
    %9 = vector.load %arg8[%c0_9, %c0_10] : memref<1x32xf32, #tpu.memory_space<vmem>>, vector<1x32xf32>
    %10 = vector.broadcast %9 : vector<1x32xf32> to vector<8x32xf32>
    %11 = arith.addf %8, %10 : vector<8x32xf32>
    %c0_11 = arith.constant 0 : index
    %c0_12 = arith.constant 0 : index
    %12 = vector.load %arg9[%c0_11, %c0_12] : memref<32x32xbf16, #tpu.memory_space<vmem>>, vector<32x32xbf16>
    %cst_13 = arith.constant dense<0.000000e+00> : vector<8x32xf32>
    %13 = tpu.matmul %1, %12, %cst_13 {dimension_numbers = #tpu.dot_dimension_numbers<[1], [0], [0], [1], [0, 0, 1, 1], [], []>} : vector<8x32xbf16>, vector<32x32xbf16>, vector<8x32xf32> -> vector<8x32xf32>
    %c0_14 = arith.constant 0 : index
    %c0_15 = arith.constant 0 : index
    %14 = vector.load %arg10[%c0_14, %c0_15] : memref<1x32xf32, #tpu.memory_space<vmem>>, vector<1x32xf32>
    %15 = vector.broadcast %14 : vector<1x32xf32> to vector<8x32xf32>
    %16 = arith.addf %13, %15 : vector<8x32xf32>
    %c0_16 = arith.constant 0 : index
    %c0_17 = arith.constant 0 : index
    %17 = vector.load %arg3[%c0_16, %c0_17] : memref<8x8xf32, #tpu.memory_space<vmem>>, vector<8x8xf32>
    %c0_18 = arith.constant 0 : index
    %c0_19 = arith.constant 0 : index
    %18 = vector.load %arg4[%c0_18, %c0_19] : memref<8x8xf32, #tpu.memory_space<vmem>>, vector<8x8xf32>
    %19 = vector.shape_cast %6 : vector<8x32xf32> to vector<8x4x8xf32>
    %20 = tpu.transpose %19, [1, 0, 2] : vector<8x4x8xf32> -> vector<4x8x8xf32>
    %21 = vector.shape_cast %11 : vector<8x32xf32> to vector<8x4x8xf32>
    %22 = tpu.transpose %21, [1, 0, 2] : vector<8x4x8xf32> -> vector<4x8x8xf32>
    %23 = vector.shape_cast %16 : vector<8x32xf32> to vector<8x4x8xf32>
    %24 = tpu.transpose %23, [1, 0, 2] : vector<8x4x8xf32> -> vector<4x8x8xf32>
    %25 = vector.shape_cast %17 : vector<8x8xf32> to vector<1x8x8xf32>
    %26 = vector.broadcast %25 : vector<1x8x8xf32> to vector<4x8x8xf32>
    %27 = arith.mulf %20, %26 : vector<4x8x8xf32>
    %28 = vector.extract_strided_slice %20 {offsets = [0, 0, 4], sizes = [4, 8, 4], strides = [1, 1, 1]} : vector<4x8x8xf32> to vector<4x8x4xf32>
    %29 = vector.extract_strided_slice %20 {offsets = [0, 0, 0], sizes = [4, 8, 4], strides = [1, 1, 1]} : vector<4x8x8xf32> to vector<4x8x4xf32>
    %30 = tpu.concatenate %28, %29 in 2 : vector<4x8x4xf32>, vector<4x8x4xf32> -> vector<4x8x8xf32>
    %31 = vector.shape_cast %18 : vector<8x8xf32> to vector<1x8x8xf32>
    %32 = vector.broadcast %31 : vector<1x8x8xf32> to vector<4x8x8xf32>
    %33 = arith.mulf %30, %32 : vector<4x8x8xf32>
    %34 = arith.addf %27, %33 : vector<4x8x8xf32>
    %35 = vector.shape_cast %17 : vector<8x8xf32> to vector<1x8x8xf32>
    %36 = vector.broadcast %35 : vector<1x8x8xf32> to vector<4x8x8xf32>
    %37 = arith.mulf %22, %36 : vector<4x8x8xf32>
    %38 = vector.extract_strided_slice %22 {offsets = [0, 0, 4], sizes = [4, 8, 4], strides = [1, 1, 1]} : vector<4x8x8xf32> to vector<4x8x4xf32>
    %39 = vector.extract_strided_slice %22 {offsets = [0, 0, 0], sizes = [4, 8, 4], strides = [1, 1, 1]} : vector<4x8x8xf32> to vector<4x8x4xf32>
    %40 = tpu.concatenate %38, %39 in 2 : vector<4x8x4xf32>, vector<4x8x4xf32> -> vector<4x8x8xf32>
    %41 = vector.shape_cast %18 : vector<8x8xf32> to vector<1x8x8xf32>
    %42 = vector.broadcast %41 : vector<1x8x8xf32> to vector<4x8x8xf32>
    %43 = arith.mulf %40, %42 : vector<4x8x8xf32>
    %44 = arith.addf %37, %43 : vector<4x8x8xf32>
    %cst_20 = arith.constant 0.510069728 : f32
    %45 = vector.broadcast %cst_20 : f32 to vector<4x8x8xf32>
    %46 = arith.mulf %34, %45 : vector<4x8x8xf32>
    %47 = arith.truncf %46 : vector<4x8x8xf32> to vector<4x8x8xbf16>
    %c0_21 = arith.constant 0 : index
    %c0_22 = arith.constant 0 : index
    %c0_23 = arith.constant 0 : index
    %c0_24 = arith.constant 0 : index
    %48 = vector.load %arg11[%c0_21, %c0_22, %c0_23, %c0_24] : memref<1x4x8x8xbf16, #tpu.memory_space<vmem>>, vector<1x4x8x8xbf16>
    %49 = vector.shape_cast %48 : vector<1x4x8x8xbf16> to vector<4x8x8xbf16>
    %50 = vector.shape_cast %47 : vector<4x8x8xbf16> to vector<1x4x8x8xbf16>
    tpu.vector_store %arg11[%c0_21, %c0_22, %c0_23, %c0_24], %50 {strides = array<i32>} : memref<1x4x8x8xbf16, #tpu.memory_space<vmem>>, vector<1x4x8x8xbf16>,
    %51 = arith.truncf %44 : vector<4x8x8xf32> to vector<4x8x8xbf16>
    %c0_25 = arith.constant 0 : index
    %c0_26 = arith.constant 0 : index
    %c0_27 = arith.constant 0 : index
    %c0_28 = arith.constant 0 : index
    %52 = vector.load %arg12[%c0_25, %c0_26, %c0_27, %c0_28] : memref<1x4x8x8xbf16, #tpu.memory_space<vmem>>, vector<1x4x8x8xbf16>
    %53 = vector.shape_cast %52 : vector<1x4x8x8xbf16> to vector<4x8x8xbf16>
    %54 = vector.shape_cast %51 : vector<4x8x8xbf16> to vector<1x4x8x8xbf16>
    tpu.vector_store %arg12[%c0_25, %c0_26, %c0_27, %c0_28], %54 {strides = array<i32>} : memref<1x4x8x8xbf16, #tpu.memory_space<vmem>>, vector<1x4x8x8xbf16>,
    %55 = arith.truncf %24 : vector<4x8x8xf32> to vector<4x8x8xbf16>
    %c0_29 = arith.constant 0 : index
    %c0_30 = arith.constant 0 : index
    %c0_31 = arith.constant 0 : index
    %c0_32 = arith.constant 0 : index
    %56 = vector.load %arg13[%c0_29, %c0_30, %c0_31, %c0_32] : memref<1x4x8x8xbf16, #tpu.memory_space<vmem>>, vector<1x4x8x8xbf16>
    %57 = vector.shape_cast %56 : vector<1x4x8x8xbf16> to vector<4x8x8xbf16>
    %58 = vector.shape_cast %55 : vector<4x8x8xbf16> to vector<1x4x8x8xbf16>
    tpu.vector_store %arg13[%c0_29, %c0_30, %c0_31, %c0_32], %58 {strides = array<i32>} : memref<1x4x8x8xbf16, #tpu.memory_space<vmem>>, vector<1x4x8x8xbf16>,
    return
  }
  func.func @transform_0(%arg0: i32, %arg1: i32) -> (i32, i32, i32) {
    %c0_i32 = arith.constant 0 : i32
    %c0_i32_0 = arith.constant 0 : i32
    return %arg0, %arg1, %c0_i32 : i32, i32, i32
  }
  func.func @transform_1(%arg0: i32, %arg1: i32) -> (i32, i32) {
    %c0_i32 = arith.constant 0 : i32
    %c0_i32_0 = arith.constant 0 : i32
    return %arg1, %c0_i32 : i32, i32
  }
  func.func @transform_2(%arg0: i32, %arg1: i32) -> (i32, i32) {
    %c0_i32 = arith.constant 0 : i32
    %c0_i32_0 = arith.constant 0 : i32
    return %arg1, %c0_i32 : i32, i32
  }
  func.func @transform_3(%arg0: i32, %arg1: i32) -> (i32, i32) {
    %c0_i32 = arith.constant 0 : i32
    %c0_i32_0 = arith.constant 0 : i32
    %c0_i32_1 = arith.constant 0 : i32
    return %c0_i32, %c0_i32_0 : i32, i32
  }
  func.func @transform_4(%arg0: i32, %arg1: i32) -> (i32, i32) {
    %c0_i32 = arith.constant 0 : i32
    %c0_i32_0 = arith.constant 0 : i32
    %c0_i32_1 = arith.constant 0 : i32
    return %c0_i32, %c0_i32_0 : i32, i32
  }
  func.func @transform_5(%arg0: i32, %arg1: i32) -> (i32, i32) {
    %c0_i32 = arith.constant 0 : i32
    %c0_i32_0 = arith.constant 0 : i32
    %c0_i32_1 = arith.constant 0 : i32
    return %c0_i32, %c0_i32_0 : i32, i32
  }
  func.func @transform_6(%arg0: i32, %arg1: i32) -> (i32, i32) {
    %c0_i32 = arith.constant 0 : i32
    %c0_i32_0 = arith.constant 0 : i32
    %c0_i32_1 = arith.constant 0 : i32
    return %c0_i32, %c0_i32_0 : i32, i32
  }
  func.func @transform_7(%arg0: i32, %arg1: i32) -> (i32, i32) {
    %c0_i32 = arith.constant 0 : i32
    %c0_i32_0 = arith.constant 0 : i32
    %c0_i32_1 = arith.constant 0 : i32
    return %c0_i32, %c0_i32_0 : i32, i32
  }
  func.func @transform_8(%arg0: i32, %arg1: i32) -> (i32, i32) {
    %c0_i32 = arith.constant 0 : i32
    %c0_i32_0 = arith.constant 0 : i32
    %c0_i32_1 = arith.constant 0 : i32
    return %c0_i32, %c0_i32_0 : i32, i32
  }
  func.func @transform_9(%arg0: i32, %arg1: i32) -> (i32, i32, i32, i32) {
    %c0_i32 = arith.constant 0 : i32
    %c0_i32_0 = arith.constant 0 : i32
    %c0_i32_1 = arith.constant 0 : i32
    return %arg0, %c0_i32, %arg1, %c0_i32_0 : i32, i32, i32, i32
  }
  func.func @transform_10(%arg0: i32, %arg1: i32) -> (i32, i32, i32, i32) {
    %c0_i32 = arith.constant 0 : i32
    %c0_i32_0 = arith.constant 0 : i32
    %c0_i32_1 = arith.constant 0 : i32
    return %arg0, %c0_i32, %arg1, %c0_i32_0 : i32, i32, i32, i32
  }
  func.func @transform_11(%arg0: i32, %arg1: i32) -> (i32, i32, i32, i32) {
    %c0_i32 = arith.constant 0 : i32
    %c0_i32_0 = arith.constant 0 : i32
    %c0_i32_1 = arith.constant 0 : i32
    return %arg0, %c0_i32, %arg1, %c0_i32_0 : i32, i32, i32, i32
  }
}

</mosaic_0001>

<bundles_post_ra>
// kernel: tpu_custom_call.1
= control target key start
LH: loop header
LB: loop body
LE: loop exit
PB: predicated region body
PF: predicated region fallthrough
CT: control target
= control target key end

     0   :  { %s2658_s0 = inlined_call_operand.hbm [shape: bf16[2,8,32], index: 0, kind: input, shape index: {}]   ;;  %s2659_s1 = inlined_call_operand.hbm [shape: f32[8,8], index: 1, kind: input, shape index: {}]   ;;  %s2660_s2 = inlined_call_operand.hbm [shape: f32[8,8], index: 2, kind: input, shape index: {}]   ;;  %s2661_s3 = inlined_call_operand.hbm [shape: bf16[32,32], index: 3, kind: input, shape index: {}]   ;;  %s2662_s4 = inlined_call_operand.vmem [shape: f32[1,32], index: 4, kind: input, shape index: {}]   ;;  %s2663_s5 = inlined_call_operand.vmem [shape: bf16[32,32], index: 5, kind: input, shape index: {}]   ;;  %s2664_s6 = inlined_call_operand.vmem [shape: f32[1,32], index: 6, kind: input, shape index: {}]   ;;  %s2665_s7 = inlined_call_operand.hbm [shape: bf16[32,32], index: 7, kind: input, shape index: {}]   ;;  %s2666_s8 = inlined_call_operand.vmem [shape: f32[1,32], index: 8, kind: input, shape index: {}]   ;;  %s2667_s9 = inlined_call_operand.hbm [shape: bf16[2,4,8,8], index: 9, kind: output, shape index: {0}]   ;;  %s2668_s10 = inlined_call_operand.hbm [shape: bf16[2,4,8,8], index: 10, kind: output, shape index: {1}]   ;;  %s2669_s11 = inlined_call_operand.hbm [shape: bf16[2,4,8,8], index: 11, kind: output, shape index: {2}]  }
   0x1   :  { %2682 = sst [smem:[#allocation20_spill]] %s2658_s0 }
   0x2   :  { %2683 = sst [smem:[#allocation21_spill]] %s2659_s1 }
   0x3   :  { %2684 = sst [smem:[#allocation22_spill]] %s2660_s2 }
   0x4   :  { %2685 = sst [smem:[#allocation23_spill]] %s2661_s3 }
   0x5   :  { %2686 = sst [smem:[#allocation24_spill]] %s2667_s9 }
   0x6   :  { %2687 = sst [smem:[#allocation25_spill]] %s2668_s10 }
   0x7   :  { %2688 = sst [smem:[#allocation26_spill]] %s2669_s11 }
   0x8   :  { %17 = vsyncpa [#allocation3], 0 }
   0x9   :  { %19 = vsyncpa [#allocation3 + $0x1], 0 }
   0xa   :  { %20 = vsyncpa [#allocation6], 0 }
   0xb   :  { %21 = vsyncpa [#allocation9], 0 }
   0xc   :  { %22 = vsyncpa [#allocation4], 0 }
   0xd   :  { %24 = vsyncpa [#allocation4 + $0x1], 0 }
   0xe   :  { %25 = vsyncpa [#allocation13], 0 }
   0xf   :  { %27 = vsyncpa [#allocation13 + $0x1], 0  ;;  %s2101_s17 = smov 0   ;;  %s2103_s18 = smov 0  }
  0x10   :  { %s2105_s19 = smov 0   ;;  %s2107_s20 = smov 0  }
  0x11   :  { %s2109_s21 = smov 0   ;;  %s2111_s22 = smov 0  }
  0x12 LB: > { %s2132_s23 = sadd.s32 4294967295, %s2019_s22   ;;  %p1514_p0 = scmp.ge.s32.totalorder %s2019_s22, 1  ;;  %s2019_s22 = sphi %s2111_s22, %s33_s22   ;;  %s2015_s21 = sphi %s2109_s21, %s2722_s21   ;;  %s2011_s20 = sphi %s2107_s20, %s2721_s20   ;;  %s2007_s19 = sphi %s2105_s19, %s2720_s19   ;;  %s2003_s18 = sphi %s2103_s18, %s2719_s18   ;;  %s1999_s17 = sphi %s2101_s17, %s2718_s17  }
  0x13   : > { %p2671_p1 = scmp.eq.s32.totalorder %s2132_s23, 0  ;;  %p340_p2 = scmp.lt.s32.totalorder %s2019_s22, 3 }
  0x14   : > { %s2021_s25 = smov [#allocation5]   ;;  %s2022_s27 = smov [#allocation8]  }
  0x15   : > { %p2137_p3 = pnand %p1514_p0, %p340_p2  ;;  %s355_s26 = sshll.u32 %s2021_s25, 4  ;;  %s356_s26 = int_to_ptr.vmem [resolvable:$true] %s355_s26 }
  0x16   : > { %s378_s28 = sshll.u32 %s2022_s27, 4  ;;  %s2023_s30 = smov [#allocation7]   ;;  %s2150_s28 = int_to_ptr.vmem [resolvable:$true] %s378_s28 }
  0x17   : > { %s2689_s24 = scalar_select %p2137_p3, 1, 0 }
  0x18   : > { %p1620_p5 = pneg %p2137_p3  ;;  %s2152_s12 = sshll.u32 %s2023_s30, 4  ;;  %s369_s12 = int_to_ptr.vmem [resolvable:$true] %s2152_s12 }
  0x19   : > { %s2691_s1 = sld [smem:[#allocation21_spill]] }
  0x1a   : > { %p2146_p6 = pnand %p1620_p5, %p2671_p1 }
  0x1c   : > { %p2162_p8 = pneg %p2146_p6 }
  0x1f   : > { %s1727_s15 = scalar_lea.hbm %s2691_s1, 128 }
  0x20   : > { %p1728_p7 = scmp.ne.s32.totalorder %s2691_s1, %s1727_s15  ;;  %p1734_p11 = scmp.lt.u32.totalorder %s1727_s15, %s2691_s1 }
  0x22   : > { %p1730_p9 = pnand %p2162_p8, %p1728_p7 }
  0x24   : > { %p1731_p10 = pneg %p1730_p9 }
  0x26   : > { %p1736_p12 = pnand %p1734_p11, %p1731_p10 }
  0x28   : > { %1739 = shalt.err (!%p1736_p12)
}
  0x29   : > { %s1740_s13 = scalar_lea.vmem %s356_s26, 128  ;;  %p1748_p5 = scmp.lt.s32.totalorder %s356_s26, %s356_s26 }
  0x2a   : > { %p1741_p13 = scmp.ne.s32.totalorder %s356_s26, %s1740_s13  ;;  %p1749_p4 = scmp.lt.s32.totalorder %s1740_s13, %s1740_s13 }
  0x2c   : > { %p1743_p0 = pnand %p1741_p13, %p2162_p8  ;;  %p1750_p1 = por %p1749_p4, %p1748_p5 }
  0x2e   : > { %p1744_p2 = pneg %p1743_p0 }
  0x30   : > { %p1751_p3 = pnand %p1750_p1, %p1744_p2 }
  0x32   : > { %1754 = shalt.err (!%p1751_p3)
}
  0x33   : > { %1623 = dma.hbm_to_vmem [thread:$0]  (!%p2146_p6), %s2691_s1, 128, %s356_s26, [#allocation6]  }
  0x34   : > { %s2693_s3 = sld [smem:[#allocation23_spill]] }
  0x3a   : > { %s1755_s25 = scalar_lea.hbm %s2693_s3, 256 }
  0x3b   : > { %p1756_p7 = scmp.ne.s32.totalorder %s2693_s3, %s1755_s25  ;;  %p1762_p1 = scmp.lt.u32.totalorder %s1755_s25, %s2693_s3 }
  0x3d   : > { %p1758_p9 = pnand %p1756_p7, %p2162_p8 }
  0x3f   : > { %p1759_p4 = pneg %p1758_p9 }
  0x41   : > { %p1764_p3 = pnand %p1762_p1, %p1759_p4 }
  0x43   : > { %1767 = shalt.err (!%p1764_p3)
}
  0x44   : > { %s1768_s26 = scalar_lea.vmem %s2150_s28, 256  ;;  %p1776_p13 = scmp.lt.s32.totalorder %s2150_s28, %s2150_s28 }
  0x45   : > { %p1769_p10 = scmp.ne.s32.totalorder %s2150_s28, %s1768_s26  ;;  %p1777_p0 = scmp.lt.s32.totalorder %s1768_s26, %s1768_s26 }
  0x47   : > { %p1771_p11 = pnand %p1769_p10, %p2162_p8  ;;  %p1778_p2 = por %p1777_p0, %p1776_p13 }
  0x49   : > { %p1772_p12 = pneg %p1771_p11 }
  0x4b   : > { %p1779_p5 = pnand %p1778_p2, %p1772_p12 }
  0x4d   : > { %1782 = shalt.err (!%p1779_p5)
}
  0x4e   : > { %s2675_s10 = smov 64   ;;  %s2025_s9 = smov 4  }
  0x4f   : > { %1629 = dma.hbm_to_vmem [thread:$0]  (!%p2146_p6), %s2693_s3, 256, %s2150_s28, [#allocation9], %s2675_s10, %s2675_s10, %s2025_s9  }
  0x50   : > { %s2694_s2 = sld [smem:[#allocation22_spill]] }
  0x56   : > { %s1783_s25 = scalar_lea.hbm %s2694_s2, 128 }
  0x57   : > { %p1784_p7 = scmp.ne.s32.totalorder %s2694_s2, %s1783_s25  ;;  %p1790_p1 = scmp.lt.u32.totalorder %s1783_s25, %s2694_s2 }
  0x59   : > { %p1786_p9 = pnand %p1784_p7, %p2162_p8 }
  0x5b   : > { %p1787_p4 = pneg %p1786_p9 }
  0x5d   : > { %p1792_p3 = pnand %p1790_p1, %p1787_p4 }
  0x5f   : > { %1795 = shalt.err (!%p1792_p3)
}
  0x60   : > { %s1796_s14 = scalar_lea.vmem %s369_s12, 128  ;;  %p1804_p13 = scmp.lt.s32.totalorder %s369_s12, %s369_s12 }
  0x61   : > { %p1797_p10 = scmp.ne.s32.totalorder %s369_s12, %s1796_s14  ;;  %p1805_p0 = scmp.lt.s32.totalorder %s1796_s14, %s1796_s14 }
  0x63   : > { %p1799_p11 = pnand %p1797_p10, %p2162_p8  ;;  %p1806_p2 = por %p1805_p0, %p1804_p13 }
  0x65   : > { %p1800_p12 = pneg %p1799_p11 }
  0x67   : > { %p1807_p5 = pnand %p1806_p2, %p1800_p12 }
  0x69   : > { %1810 = shalt.err (!%p1807_p5)
}
  0x6a   : > { %1626 = dma.hbm_to_vmem [thread:$0]  (!%p2146_p6), %s2694_s2, 128, %s369_s12, [#allocation6]  }
  0x6b   : > { %s2026_s1 = smov [#allocation10]   ;;  %s1811_s30 = scalar_lea.hbm %s2665_s7, 256 }
  0x6c   : > { %s400_s11 = sshll.u32 %s2026_s1, 4  ;;  %p1812_p7 = scmp.ne.s32.totalorder %s2665_s7, %s1811_s30  ;;  %s401_s11 = int_to_ptr.vmem [resolvable:$true] %s400_s11 }
  0x6d   : > { %p1818_p1 = scmp.lt.u32.totalorder %s1811_s30, %s2665_s7 }
  0x6e   : > { %p1814_p9 = pnand %p1812_p7, %p2162_p8 }
  0x70   : > { %p1815_p4 = pneg %p1814_p9 }
  0x72   : > { %p1820_p3 = pnand %p1818_p1, %p1815_p4 }
  0x74   : > { %1823 = shalt.err (!%p1820_p3)
}
  0x75   : > { %s1824_s12 = scalar_lea.vmem %s401_s11, 256  ;;  %p1832_p13 = scmp.lt.s32.totalorder %s401_s11, %s401_s11 }
  0x76   : > { %p1825_p10 = scmp.ne.s32.totalorder %s401_s11, %s1824_s12  ;;  %p1833_p0 = scmp.lt.s32.totalorder %s1824_s12, %s1824_s12 }
  0x78   : > { %p1827_p11 = pnand %p1825_p10, %p2162_p8  ;;  %p1834_p2 = por %p1833_p0, %p1832_p13 }
  0x7a   : > { %p1828_p12 = pneg %p1827_p11 }
  0x7c   : > { %p1835_p5 = pnand %p1834_p2, %p1828_p12 }
  0x7e   : > { %1838 = shalt.err (!%p1835_p5)
}
  0x7f   : > { %s2695_s28 = smov 64   ;;  %s2676_s29 = sadd.s32 4294967294, %s2019_s22  }
  0x80   : > { %1632 = dma.hbm_to_vmem [thread:$0]  (!%p2146_p6), %s2665_s7, 256, %s401_s11, [#allocation9], %s2695_s28, %s2695_s28, %s2025_s9  }
  0x81   : > { %s45_s27 = sadd.s32 1, %s2015_s21  ;;  %s54_s1 = sadd.s32 1, %s2007_s19 }
  0x82   : > { %p47_p8 = scmp.ge.s32.totalorder %s45_s27, 2  ;;  %p61_p7 = scmp.ne.s32.totalorder %s2007_s19, %s2003_s18 }
  0x83   : > { %p62_p9 = scmp.eq.s32.totalorder %s2019_s22, 0  ;;  %p67_p1 = scmp.ne.s32.totalorder %s2003_s18, %s1999_s17 }
  0x84   : > { %s2724_s27 = smov (%p47_p8, %s45_s27), 0  ;;  %p271_p6 = scmp.eq.s32.totalorder %s2132_s23, 1 }
  0x85   : > { %p2252_p4 = por %p62_p9, %p61_p7  ;;  %s49_s9 = ssub.s32 %s2015_s21, %s2724_s27 }
  0x86   : > { %p52_p3 = scmp.eq.s32.totalorder %s49_s9, 0  ;;  %p2697_p10 = scmp.eq.s32.totalorder %s2132_s23, 0 }
  0x87   : > { %p2267_p12 = por %p271_p6, %p61_p7  ;;  %p277_p13 = scmp.eq.s32.totalorder %s2676_s29, 1 }
  0x88   : > { %p2263_p11 = por %p2697_p10, %p67_p1  ;;  %p1651_p2 = scmp.lt.s32.totalorder %s2019_s22, 2 }
  0x89   : > { %s2699_s25 = scalar_select %p2267_p12, 1, 0 }
  0x8a   : > { %s2274_s30 = scalar_select %p52_p3, %s2007_s19, %s54_s1  }
  0x8b   : > { %p2276_p0 = por %p277_p13, %p67_p1  ;;  %s417_s26 = sand.u32 1, %s2007_s19  }
  0x8c   : > { %s1521_s14 = sshll.u32 %s2015_s21, 6  ;;  %s1520_s12 = sshll.u32 %s417_s26, 2 }
  0x8d   : > { %s2700_s13 = scalar_select %p2276_p0, 1, 0 }
  0x8e   : > { %s2701_s0 = sld [smem:[#allocation20_spill]]  ;;  %s421_s9 = scalar_lea.vmem [#allocation2], %s1520_s12 }
  0x8f   : > { %s429_s1 = sshll.u32 %s421_s9, 4  ;;  %p2290_p5 = pnand %p1651_p2, %p2252_p4  ;;  %s2294_s1 = int_to_ptr.vmem [resolvable:$true] %s429_s1 }
  0x90   : > { %s418_s2 = scalar_lea.sflag [#allocation3], %s417_s26 }
  0x91   : > { %p1841_p7 = pneg %p2290_p5 }
  0x94   : > { %s2286_s16 = scalar_lea.hbm %s2701_s0, %s1521_s14  ;;  %s1844_s15 = scalar_lea.hbm %s2701_s0, 128 }
  0x95   : > { %s1839_s3 = scalar_lea.hbm %s2286_s16, 64  ;;  %p1845_p4 = scmp.lt.u32.totalorder %s2286_s16, %s2701_s0 }
  0x96   : > { %p1840_p8 = scmp.ne.s32.totalorder %s2286_s16, %s1839_s3  ;;  %p1846_p6 = scmp.lt.u32.totalorder %s1844_s15, %s1839_s3 }
  0x97   : > { %p1848_p10 = scmp.lt.u32.totalorder %s1839_s3, %s2286_s16 }
  0x98   : > { %p1842_p9 = pnand %p1841_p7, %p1840_p8  ;;  %p1847_p3 = por %p1846_p6, %p1845_p4 }
  0x9a   : > { %p1843_p1 = pneg %p1842_p9  ;;  %p1849_p13 = por %p1848_p10, %p1847_p3 }
  0x9c   : > { %p1850_p2 = pnand %p1849_p13, %p1843_p1 }
  0x9e   : > { %1853 = shalt.err (!%p1850_p2)
}
  0x9f   : > { %s1854_s26 = scalar_lea.vmem %s2294_s1, 64  ;;  %s2027_s9 = smov [#allocation2]  }
  0xa0   : > { %p1855_p8 = scmp.ne.s32.totalorder %s2294_s1, %s1854_s26  ;;  %s1859_s14 = sshll.u32 %s2027_s9, 4  ;;  %s1860_s14 = int_to_ptr.vmem [resolvable:$false] %s1859_s14 }
  0xa1   : > { %s1861_s12 = scalar_lea.vmem %s1860_s14, 128  ;;  %p1862_p12 = scmp.lt.s32.totalorder %s2294_s1, %s1860_s14 }
  0xa2   : > { %p1857_p9 = pnand %p1855_p8, %p1841_p7  ;;  %p1863_p4 = scmp.lt.s32.totalorder %s1861_s12, %s1854_s26 }
  0xa4   : > { %p1858_p0 = pneg %p1857_p9  ;;  %p1864_p6 = por %p1863_p4, %p1862_p12 }
  0xa6   : > { %p1865_p3 = pnand %p1864_p6, %p1858_p0 }
  0xa8   : > { %1868 = shalt.err (!%p1865_p3)
}
  0xa9   : > { %1636 = dma.hbm_to_vmem [thread:$0]  (!%p2290_p5), %s2286_s16, 64, %s2294_s1, %s418_s2  }
  0xaa   : > { %p2703_p1 = scmp.ne.s32.totalorder %s2689_s24, 0 }
  0xab   : > { %s2324_s3 = sand.u32 (!%p2703_p1), 1, %s2003_s18  }
  0xac   : > { %438 = sbr.rel (%p2703_p1) target bundleno = 753 (0x2f1), region = 56  ;;  %s1523_s15 = sshll.u32 (!%p2703_p1), %s2324_s3, 2 }
  0xad   : > { %s441_s28 = scalar_lea.sflag (!%p2703_p1), [#allocation3], %s2324_s3  ;;  %s444_s10 = scalar_lea.vmem (!%p2703_p1), [#allocation2], %s1523_s15 }
  0xb3   : > { %1978 = dma.done.wait (%p2263_p11), %s441_s28, 64  }
  0xb4   : > { %1980 = vsyncadd (%p2263_p11), %s441_s28, 4294967232  ;;  %p2704_p12 = scmp.eq.s32.totalorder %s2132_s23, 0 }
  0xb6   : > { %1982 = dma.done.wait (%p2704_p12), [#allocation6], 256   ;;  %p2705_p0 = pmov %p2704_p12 }
  0xb8   : > { %1984 = vsyncadd (%p2705_p0), [#allocation6], 4294967040  ;;  %p2706_p5 = pmov %p2705_p0 }
  0xb9   : > { %p2707_p7 = pmov %p2705_p0 }
  0xba   : > { %1986 = dma.done.wait (%p2706_p5), [#allocation9], 512  }
  0xbb   : > { %1988 = vsyncadd (%p2707_p7), [#allocation9], 4294966784  ;;  %v2028_v0 = vmov 0.0   ;;  %vm2029_vm0 = vmmov 0   ;;  %v1721_v1 = vld [vmem:[#allocation8] sm:$0xff]   ;;  %v1722_v2 = vld [vmem:[#allocation8 + $0x8] sm:$0xff]   ;;  %v721_v28 = vlaneseq }
  0xbc   : > { %1572 = vmatprep.subr.bf16.mxu0 %v2028_v0  ;;  %1580 = vmatprep.subr.bf16.mxu1 %v2028_v0  ;;  %v1723_v3 = vld [vmem:[%s2663_s5] sm:$0xff]   ;;  %v1724_v4 = vld [vmem:[%s2663_s5 + $0x8] sm:$0xff]   ;;  %v510_v5 = vld [vmem:[%s444_s10] sm:$0xf]  ;;  %vm534_vm1 = vcmask 261120   ;;  %s2030_s14 = smov 104  }
  0xbd   : > { %1576 = vmatprep.mubr.msk.bf16.mxu0 %vm2029_vm0, %v2028_v0  ;;  %1584 = vmatprep.mubr.msk.bf16.mxu1 %vm2029_vm0, %v2028_v0  ;;  %v1725_v6 = vld [vmem:[#allocation10] sm:$0xff]   ;;  %v1726_v7 = vld [vmem:[#allocation10 + $0x8] sm:$0xff]   ;;  %s2031_s12 = smov 120   ;;  %s2032_s15 = smov 112   ;;  %v2033_v26 = vmov 1983009808  }
  0xbe   : > { %1573 = vmatpush3.bf16.msra.mxu0 %v1721_v1  ;;  %1581 = vmatpush3.bf16.msra.mxu1 %v1723_v3  ;;  %v1531_v8 = vld [vmem:[%s2662_s4] ss:$0 sm:$0xff]  ;;  %v719_v27 = vunpack.c.l.s4 %v2033_v26  ;;  %v2034_v29 = vmov 1934713408   ;;  %v722_v32 = vshrl.u32 %v721_v28, 7  ;;  %s2035_s2 = smov 124  }
  0xbf   : > { %1574 = vmatprep.subr.bf16.mxu0 %v2028_v0  ;;  %1582 = vmatprep.subr.bf16.mxu1 %v2028_v0  ;;  %v1535_v10 = vld [vmem:[%s2664_s6] ss:$0 sm:$0xff]  ;;  %v751_v30 = vunpack.c.l.s4 %v2034_v29  ;;  %s2426_s24 = sshll.u32 %s2324_s3, 4  ;;  %vm1241_vm2 = vcmask 60416   ;;  %s2678_s29 = smov 4   ;;  %vm1176_vm3 = vcmask 31744  }
  0xc0   : > { %v1539_v20 = vld [vmem:[%s2666_s8] ss:$0 sm:$0xff]  ;;  %v720_v31 = vunpack.c.0.s8 %v719_v27  ;;  %s2437_s11 = scalar_lea.vmem [#allocation14], %s2426_s24  ;;  %s2500_s16 = sshll.u32 %s2011_s20, 8 }
  0xc1   : > { %v752_v35 = vunpack.c.0.s8 %v751_v30  ;;  %s494_s1 = scalar_lea.vmem [#allocation11], %s2426_s24  ;;  %p2709_p10 = scmp.ne.s32.totalorder %s2699_s25, 0 }
  0xc2   : > { %1575 = vmatpush3.bf16.msra.mxu0 %v1722_v2  ;;  %1583 = vmatpush3.bf16.msra.mxu1 %v1724_v4  ;;  %v2363_v36 = vsub.s32 %v720_v31, %v722_v32  ;;  %s1287_s26 = sshll.u32 %s494_s1, 4  ;;  %s2037_s10 = smov [#allocation11]   ;;  %s2511_s26 = int_to_ptr.vmem [resolvable:$true] %s1287_s26 }
  0xc3   : > { %1588 = vmatprep.subr.bf16.mxu0 %v2028_v0  ;;  %v2365_v43 = vsub.s32 %v752_v35, %v722_v32  ;;  %s1869_s28 = scalar_lea.vmem %s2511_s26, 256 }
  0xc4   : > { %p1870_p11 = scmp.ne.s32.totalorder %s2511_s26, %s1869_s28 }
  0xc5   : > { %1577 = vmatmul.mubr.msk.bf16.vlgmr.msra.gmra.mrb[0].mxu0 %vm534_vm1, %v510_v5  ;;  %1585 = vmatmul.mubr.msk.bf16.vlgmr.msra.gmra.mrb[0].mxu1 %vm534_vm1, %v510_v5 }
  0xc6   : > { %1589 = vmatpush3.bf16.msra.mxu0 %v1725_v6  ;;  %1592 = vmatprep.mubr.msk.bf16.mxu0 %vm2029_vm0, %v2028_v0  ;;  %p1871_p13 = pnand %p1870_p11, %p2709_p10 }
  0xc7   : > { %1590 = vmatprep.subr.bf16.mxu0 %v2028_v0 }
  0xc8   : > { %p1872_p2 = pneg %p1871_p13 }
  0xca   : > { %1591 = vmatpush3.bf16.msra.mxu0 %v1726_v7 }
  0xcd   : > { %1593 = vmatmul.mubr.msk.bf16.vlgmr.msra.gmra.mrb[4].mxu0 %vm534_vm1, %v510_v5 }
 0x198   : > { %v572_v9 = vpop.f32.mrb[0].mxu0  ;;  %v635_v14 = vpop.f32.mrb[0].mxu1 }
 0x199   : > { %v573_v11 = vadd.f32 %v1531_v8, %v572_v9  ;;  %v1578_v12 = vpop.f32.mrb[1].mxu0  ;;  %v636_v16 = vadd.f32 %v1535_v10, %v635_v14  ;;  %v1586_v17 = vpop.f32.mrb[1].mxu1 }
 0x19a   : > { %v575_v13 = vpop.f32.mrb[2].mxu0  ;;  %v638_v18 = vpop.f32.mrb[2].mxu1 }
 0x19b   : > { %713 = vrot.lane.b32.xlu1 %v573_v11, %s2030_s14  ;;  %707 = vrot.lane.b32.xlu0 %v573_v11, %s2031_s12  ;;  %v1579_v15 = vpop.f32.mrb[3].mxu0  ;;  %v1587_v19 = vpop.f32.mrb[3].mxu1 }
 0x19f   : > { %853 = vrot.lane.b32.xlu1 %v636_v16, %s2031_s12  ;;  %710 = vrot.lane.b32.xlu0 %v573_v11, %s2032_s15 }
 0x1a0   : > { %v698_v21 = vpop.f32.mrb[4].mxu0 }
 0x1a1   : > { %v1594_v22 = vpop.f32.mrb[5].mxu0  ;;  %v2358_v24 = vadd.f32 %v1539_v20, %v698_v21 }
 0x1a2   : > { %v701_v23 = vpop.f32.mrb[6].mxu0 }
 0x1a3   : > { %859 = vrot.lane.b32.xlu1 %v636_v16, %s2030_s14  ;;  %856 = vrot.lane.b32.xlu0 %v636_v16, %s2032_s15  ;;  %v1595_v25 = vpop.f32.mrb[7].mxu0 }
 0x1a7   : > { %999 = vrot.lane.b32.xlu0 %v2358_v24, %s2031_s12  ;;  %1002 = vrot.lane.b32.xlu1 %v2358_v24, %s2032_s15  ;;  %s2708_s12 = sld [smem:[#allocation24_spill]] }
 0x1ab   : > { %1005 = vrot.lane.b32.xlu0 %v2358_v24, %s2030_s14 }
 0x1ad   : > { %s2509_s15 = scalar_lea.hbm %s2708_s12, %s2500_s16 }
 0x20d   : > { %v714_v33 = vpop.permute.xlu1 %713  ;;  %v708_v34 = vpop.permute.xlu0 %707 }
 0x20e   : > { %v732_v37 = vcombine.low %v708_v34, %v714_v33  ;;  %v733_v38 = vcombine.high %v708_v34, %v714_v33 }
 0x210   : > { %v740_v44 = vrot.slane %v732_v37, %v2363_v36  ;;  %v747_v45 = vrot.slane %v733_v38, %v2363_v36 }
 0x211   : > { %v854_v39 = vpop.permute.xlu1 %853  ;;  %v711_v40 = vpop.permute.xlu0 %710 }
 0x212   : > { %v716_v41 = vcombine.low %v573_v11, %v711_v40  ;;  %v717_v42 = vcombine.high %v573_v11, %v711_v40 }
 0x214   : > { %v724_v46 = vrot.slane %v716_v41, %v2363_v36  ;;  %v731_v47 = vrot.slane %v717_v42, %v2363_v36 }
 0x215   : > { %v860_v48 = vpop.permute.xlu1 %859  ;;  %v857_v49 = vpop.permute.xlu0 %856 }
 0x216   : > { %v748_v50 = vcombine.low %v724_v46, %v740_v44  ;;  %v749_v51 = vcombine.high %v724_v46, %v740_v44  ;;  %v764_v52 = vcombine.low %v731_v47, %v747_v45  ;;  %v765_v53 = vcombine.high %v731_v47, %v747_v45 }
 0x217   : > { %v878_v54 = vcombine.low %v854_v39, %v860_v48  ;;  %v879_v55 = vcombine.high %v854_v39, %v860_v48  ;;  %v862_v56 = vcombine.low %v636_v16, %v857_v49  ;;  %v863_v57 = vcombine.high %v636_v16, %v857_v49 }
 0x218   : > { %v756_v58 = vrot.slane %v748_v50, %v2365_v43  ;;  %v763_v59 = vrot.slane %v749_v51, %v2365_v43  ;;  %v772_v60 = vrot.slane %v764_v52, %v2365_v43  ;;  %v779_v61 = vrot.slane %v765_v53, %v2365_v43 }
 0x219   : > { %v886_v62 = vrot.slane %v878_v54, %v2363_v36  ;;  %v893_v63 = vrot.slane %v879_v55, %v2363_v36  ;;  %v870_v0 = vrot.slane %v862_v56, %v2363_v36  ;;  %v877_v1 = vrot.slane %v863_v57, %v2363_v36  ;;  %v1000_v2 = vpop.permute.xlu0 %999  ;;  %v1003_v3 = vpop.permute.xlu1 %1002 }
 0x21a   : > { %v784_v4 = vcombine.low %v756_v58, %v763_v59  ;;  %v1543_v5 = vcombine.high %v756_v58, %v763_v59  ;;  %v800_v6 = vcombine.low %v772_v60, %v779_v61  ;;  %v1544_v7 = vcombine.high %v772_v60, %v779_v61 }
 0x21b   : > { %v894_v8 = vcombine.low %v870_v0, %v886_v62  ;;  %v895_v9 = vcombine.high %v870_v0, %v886_v62  ;;  %v910_v10 = vcombine.low %v877_v1, %v893_v63  ;;  %v911_v11 = vcombine.high %v877_v1, %v893_v63 }
 0x21c   : > { %v1008_v12 = vcombine.low %v2358_v24, %v1003_v3  ;;  %v1009_v13 = vcombine.high %v2358_v24, %v1003_v3  ;;  %v791_v17 = vrot.slane %v784_v4, %v2363_v36  ;;  %v799_v18 = vrot.slane %v1543_v5, %v2363_v36 }
 0x21d   : > { %v902_v14 = vrot.slane %v894_v8, %v2365_v43  ;;  %v909_v15 = vrot.slane %v895_v9, %v2365_v43  ;;  %v1006_v16 = vpop.permute.xlu0 %1005  ;;  %v807_v24 = vrot.slane %v800_v6, %v2363_v36  ;;  %v815_v26 = vrot.slane %v1544_v7, %v2363_v36 }
 0x21e   : > { %v1024_v19 = vcombine.low %v1000_v2, %v1006_v16  ;;  %v1025_v20 = vcombine.high %v1000_v2, %v1006_v16  ;;  %v1016_v21 = vrot.slane %v1008_v12, %v2363_v36  ;;  %v1023_v22 = vrot.slane %v1009_v13, %v2363_v36 }
 0x21f   : > { %v918_v27 = vrot.slane %v910_v10, %v2365_v43  ;;  %v925_v28 = vrot.slane %v911_v11, %v2365_v43  ;;  %v930_v29 = vcombine.low %v902_v14, %v909_v15  ;;  %v816_v30 = vcombine.low %v791_v17, %v799_v18 }
 0x220   : > { %v1032_v23 = vrot.slane %v1024_v19, %v2363_v36  ;;  %v1039_v25 = vrot.slane %v1025_v20, %v2363_v36  ;;  %v832_v37 = vcombine.low %v807_v24, %v815_v26  ;;  %v817_v38 = vcombine.high %v791_v17, %v799_v18 }
 0x221   : > { %v824_v35 = vrot.slane %v816_v30, %v2365_v43  ;;  %v833_v39 = vcombine.high %v807_v24, %v815_v26  ;;  %v1545_v45 = vcombine.high %v902_v14, %v909_v15  ;;  %v946_v46 = vcombine.low %v918_v27, %v925_v28 }
 0x222   : > { %v1040_v31 = vcombine.low %v1016_v21, %v1032_v23  ;;  %v1041_v32 = vcombine.high %v1016_v21, %v1032_v23  ;;  %v1056_v33 = vcombine.low %v1023_v22, %v1039_v25  ;;  %v1057_v34 = vcombine.high %v1023_v22, %v1039_v25 }
 0x223   : > { %v1546_v47 = vcombine.high %v918_v27, %v925_v28  ;;  %v840_v48 = vrot.slane %v832_v37, %v2365_v43  ;;  %v831_v55 = vrot.slane %v817_v38, %v2365_v43  ;;  %v847_v56 = vrot.slane %v833_v39, %v2365_v43 }
 0x224   : > { %v1048_v40 = vrot.slane %v1040_v31, %v2365_v43  ;;  %v1055_v41 = vrot.slane %v1041_v32, %v2365_v43  ;;  %v1064_v42 = vrot.slane %v1056_v33, %v2365_v43  ;;  %v1071_v44 = vrot.slane %v1057_v34, %v2365_v43  ;;  %v2479_v33 = vld [vmem:[#allocation5] sm:$0xff]  ;;  %v2481_v34 = vld [vmem:[#allocation7] sm:$0xff] }
 0x225   : > { %v2399_v53 = vcombine.low %v824_v35, %v840_v48  ;;  %v2401_v54 = vcombine.high %v824_v35, %v840_v48  ;;  %v937_v61 = vrot.slane %v930_v29, %v2363_v36  ;;  %v945_v62 = vrot.slane %v1545_v45, %v2363_v36 }
 0x226   : > { %v1076_v49 = vcombine.low %v1048_v40, %v1055_v41  ;;  %v1547_v50 = vcombine.high %v1048_v40, %v1055_v41  ;;  %v1092_v51 = vcombine.low %v1064_v42, %v1071_v44  ;;  %v1548_v52 = vcombine.high %v1064_v42, %v1071_v44 }
 0x227   : > { %1152 = vrot.lane.b32.xlu1 %v2399_v53, %s2035_s2  ;;  %1154 = vrot.lane.b32.xlu0 %v2401_v54, %s2035_s2  ;;  %v2415_v3 = vcombine.low %v831_v55, %v847_v56  ;;  %v2417_v4 = vcombine.high %v831_v55, %v847_v56  ;;  %v953_v5 = vrot.slane %v946_v46, %v2363_v36 }
 0x228   : > { %v1083_v57 = vrot.slane %v1076_v49, %v2363_v36  ;;  %v1091_v58 = vrot.slane %v1547_v50, %v2363_v36  ;;  %v1099_v59 = vrot.slane %v1092_v51, %v2363_v36  ;;  %v1107_v60 = vrot.slane %v1548_v52, %v2363_v36 }
 0x229   : > { %v961_v6 = vrot.slane %v1546_v47, %v2363_v36  ;;  %v962_v14 = vcombine.low %v937_v61, %v945_v62  ;;  %v963_v22 = vcombine.high %v937_v61, %v945_v62  ;;  %v1144_v40 = vmul.f32 %v2399_v53, %v2479_v33 }
 0x22a   : > { %v1108_v63 = vcombine.low %v1083_v57, %v1091_v58  ;;  %v1109_v0 = vcombine.high %v1083_v57, %v1091_v58  ;;  %v1124_v1 = vcombine.low %v1099_v59, %v1107_v60  ;;  %v1125_v2 = vcombine.high %v1099_v59, %v1107_v60 }
 0x22b   : > { %1156 = vrot.lane.b32.xlu1 %v2415_v3, %s2035_s2  ;;  %1158 = vrot.lane.b32.xlu0 %v2417_v4, %s2035_s2  ;;  %v978_v15 = vcombine.low %v953_v5, %v961_v6  ;;  %v970_v20 = vrot.slane %v962_v14, %v2365_v43  ;;  %v979_v23 = vcombine.high %v953_v5, %v961_v6 }
 0x22c   : > { %v1116_v7 = vrot.slane %v1108_v63, %v2365_v43  ;;  %v1123_v8 = vrot.slane %v1109_v0, %v2365_v43  ;;  %v1132_v9 = vrot.slane %v1124_v1, %v2365_v43  ;;  %v1139_v10 = vrot.slane %v1125_v2, %v2365_v43 }
 0x22d   : > { %v986_v21 = vrot.slane %v978_v15, %v2365_v43  ;;  %v977_v26 = vrot.slane %v963_v22, %v2365_v43  ;;  %v993_v27 = vrot.slane %v979_v23, %v2365_v43  ;;  %v1145_v42 = vmul.f32 %v2401_v54, %v2479_v33 }
 0x22e   : > { %v1140_v11 = vcombine.low %v1116_v7, %v1132_v9  ;;  %v1141_v12 = vcombine.high %v1116_v7, %v1132_v9  ;;  %v1142_v36 = vcombine.low %v1123_v8, %v1139_v10  ;;  %v1143_v13 = vcombine.high %v1123_v8, %v1139_v10 }
 0x22f   : > { %1164 = vrot.lane.b32.xlu1 %v2399_v53, %s2678_s29  ;;  %1166 = vrot.lane.b32.xlu0 %v2401_v54, %s2678_s29  ;;  %v2453_v25 = vcombine.low %v970_v20, %v986_v21  ;;  %v2455_v24 = vcombine.high %v970_v20, %v986_v21  ;;  %v2463_v28 = vcombine.low %v977_v26, %v993_v27 }
 0x230   : > { %v1254_v16 = vpack.c.bf16 %v1140_v11, %v1140_v11  ;;  %v1255_v17 = vpack.c.bf16 %v1141_v12, %v1141_v12  ;;  %v1256_v18 = vpack.c.bf16 %v1142_v36, %v1142_v36  ;;  %v1257_v19 = vpack.c.bf16 %v1143_v13, %v1143_v13 }
 0x231   : > { %v2465_v29 = vcombine.high %v977_v26, %v993_v27  ;;  %v1146_v49 = vmul.f32 %v2415_v3, %v2479_v33  ;;  %v1147_v51 = vmul.f32 %v2417_v4, %v2479_v33 }
 0x232   : > { %1258 = vst.msk [vmem:[%s2437_s11] sm:$0xf] %vm1241_vm2, %v1254_v16  ;;  %1259 = vst.msk [vmem:[%s2437_s11 + $0x4] sm:$0xf] %vm1241_vm2, %v1255_v17 }
 0x233   : > { %1260 = vst.msk [vmem:[%s2437_s11 + $0x8] sm:$0xf] %vm1241_vm2, %v1256_v18  ;;  %1261 = vst.msk [vmem:[%s2437_s11 + $0xc] sm:$0xf] %vm1241_vm2, %v1257_v19  ;;  %1168 = vrot.lane.b32.xlu1 %v2415_v3, %s2678_s29  ;;  %1170 = vrot.lane.b32.xlu0 %v2417_v4, %s2678_s29 }
 0x237   : > { %1197 = vrot.lane.b32.xlu1 %v2453_v25, %s2035_s2  ;;  %1199 = vrot.lane.b32.xlu0 %v2455_v24, %s2035_s2 }
 0x23b   : > { %1201 = vrot.lane.b32.xlu1 %v2463_v28, %s2035_s2  ;;  %1203 = vrot.lane.b32.xlu0 %v2465_v29, %s2035_s2  ;;  %s1873_s2 = sshll.u32 %s2037_s10, 4  ;;  %s1874_s2 = int_to_ptr.vmem [resolvable:$false] %s1873_s2 }
 0x23c   : > { %s1875_s9 = scalar_lea.vmem %s1874_s2, 512  ;;  %p1876_p8 = scmp.lt.s32.totalorder %s2511_s26, %s1874_s2 }
 0x23d   : > { %p1877_p9 = scmp.lt.s32.totalorder %s1875_s9, %s1869_s28 }
 0x23f   : > { %1209 = vrot.lane.b32.xlu1 %v2453_v25, %s2678_s29  ;;  %1211 = vrot.lane.b32.xlu0 %v2455_v24, %s2678_s29  ;;  %p1878_p4 = por %p1877_p9, %p1876_p8 }
 0x241   : > { %p1879_p6 = pnand %p1878_p4, %p1872_p2 }
 0x243   : > { %1213 = vrot.lane.b32.xlu1 %v2463_v28, %s2678_s29  ;;  %1215 = vrot.lane.b32.xlu0 %v2465_v29, %s2678_s29 }
 0x299   : > { %v1153_v43 = vpop.permute.xlu1 %1152  ;;  %v1155_v30 = vpop.permute.xlu0 %1154 }
 0x29d   : > { %v1157_v31 = vpop.permute.xlu1 %1156  ;;  %v1159_v32 = vpop.permute.xlu0 %1158 }
 0x2a1   : > { %v1165_v35 = vpop.permute.xlu1 %1164  ;;  %v1167_v37 = vpop.permute.xlu0 %1166 }
 0x2a2   : > { %v1177_v38 = vsel %vm1176_vm3, %v1153_v43, %v1165_v35  ;;  %v1178_v39 = vsel %vm1176_vm3, %v1155_v30, %v1167_v37 }
 0x2a3   : > { %v1181_v41 = vmul.f32 %v1177_v38, %v2481_v34  ;;  %v1182_v44 = vmul.f32 %v1178_v39, %v2481_v34 }
 0x2a5   : > { %v1185_v45 = vadd.f32 %v1181_v41, %v1144_v40  ;;  %v1186_v46 = vadd.f32 %v1182_v44, %v1145_v42  ;;  %v1169_v47 = vpop.permute.xlu1 %1168  ;;  %v1171_v48 = vpop.permute.xlu0 %1170 }
 0x2a6   : > { %v1179_v50 = vsel %vm1176_vm3, %v1157_v31, %v1169_v47  ;;  %v1180_v52 = vsel %vm1176_vm3, %v1159_v32, %v1171_v48 }
 0x2a7   : > { %v1233_v53 = vmul.f32 0.5100697, %v1185_v45  ;;  %v1234_v54 = vmul.f32 0.5100697, %v1186_v46  ;;  %v1183_v55 = vmul.f32 %v1179_v50, %v2481_v34  ;;  %v1184_v56 = vmul.f32 %v1180_v52, %v2481_v34 }
 0x2a9   : > { %v1237_v57 = vpack.c.bf16 %v1233_v53, %v1233_v53  ;;  %v1238_v58 = vpack.c.bf16 %v1234_v54, %v1234_v54  ;;  %v1187_v59 = vadd.f32 %v1183_v55, %v1146_v49  ;;  %v1188_v60 = vadd.f32 %v1184_v56, %v1147_v51  ;;  %v1198_v61 = vpop.permute.xlu1 %1197  ;;  %v1200_v62 = vpop.permute.xlu0 %1199 }
 0x2ab   : > { %1242 = vst.msk [vmem:[%s494_s1] sm:$0xf] %vm1241_vm2, %v1237_v57  ;;  %1243 = vst.msk [vmem:[%s494_s1 + $0x4] sm:$0xf] %vm1241_vm2, %v1238_v58  ;;  %v1235_v63 = vmul.f32 0.5100697, %v1187_v59 }
 0x2ac   : > { %v1236_v0 = vmul.f32 0.5100697, %v1188_v60 }
 0x2ad   : > { %v1239_v1 = vpack.c.bf16 %v1235_v63, %v1235_v63  ;;  %v1202_v3 = vpop.permute.xlu1 %1201  ;;  %v1204_v4 = vpop.permute.xlu0 %1203 }
 0x2ae   : > { %v1240_v2 = vpack.c.bf16 %v1236_v0, %v1236_v0 }
 0x2af   : > { %1244 = vst.msk [vmem:[%s494_s1 + $0x8] sm:$0xf] %vm1241_vm2, %v1239_v1 }
 0x2b0   : > { %1245 = vst.msk [vmem:[%s494_s1 + $0xc] sm:$0xf] %vm1241_vm2, %v1240_v2 }
 0x2b1   : > { %1882 = shalt.err (!%p1879_p6)
}
 0x2b2   : > { %s1883_s1 = scalar_lea.hbm %s2509_s15, 256  ;;  %s1887_s10 = scalar_lea.hbm %s2708_s12, 512 }
 0x2b3   : > { %p1884_p3 = scmp.ne.s32.totalorder %s2509_s15, %s1883_s1  ;;  %p1888_p0 = scmp.lt.u32.totalorder %s2509_s15, %s2708_s12 }
 0x2b4   : > { %p1889_p5 = scmp.lt.u32.totalorder %s1887_s10, %s1883_s1  ;;  %p1891_p11 = scmp.lt.u32.totalorder %s1883_s1, %s2509_s15 }
 0x2b5   : > { %p1885_p1 = pnand %p1884_p3, %p2709_p10 }
 0x2b6   : > { %p1890_p7 = por %p1889_p5, %p1888_p0 }
 0x2b7   : > { %p1886_p12 = pneg %p1885_p1 }
 0x2b8   : > { %p1892_p13 = por %p1891_p11, %p1890_p7 }
 0x2ba   : > { %p1893_p2 = pnand %p1892_p13, %p1886_p12 }
 0x2bc   : > { %1896 = shalt.err (!%p1893_p2)
}
 0x2bd   : > { %s2680_s28 = smov 64   ;;  %s2710_s9 = smov 4   ;;  %v1210_v5 = vpop.permute.xlu1 %1209  ;;  %v1212_v6 = vpop.permute.xlu0 %1211  ;;  %v1189_v9 = vmul.f32 %v2453_v25, %v2479_v33  ;;  %v1190_v11 = vmul.f32 %v2455_v24, %v2479_v33  ;;  %v1191_v16 = vmul.f32 %v2463_v28, %v2479_v33  ;;  %v1192_v18 = vmul.f32 %v2465_v29, %v2479_v33 }
 0x2be   : > { %s2711_s0 = scalar_lea.sflag [#allocation4], %s2324_s3  ;;  %v1221_v7 = vsel %vm1176_vm3, %v1198_v61, %v1210_v5  ;;  %v1222_v8 = vsel %vm1176_vm3, %v1200_v62, %v1212_v6  ;;  %s501_s3 = scalar_lea.vmem [#allocation12], %s2426_s24 }
 0x2bf   : > { %1614 = dma.vmem_to_hbm [thread:$0]  (%p2709_p10), %s2511_s26, 256, %s2509_s15, %s2711_s0, %s2680_s28, %s2680_s28, %s2710_s9   ;;  %v1225_v10 = vmul.f32 %v1221_v7, %v2481_v34  ;;  %v1226_v12 = vmul.f32 %v1222_v8, %v2481_v34 }
 0x2c0   : > { %s1267_s0 = sand.u32 1, %s2132_s23   ;;  %s1304_s29 = sshll.u32 %s501_s3, 4  ;;  %s2569_s29 = int_to_ptr.vmem [resolvable:$true] %s1304_s29 }
 0x2c1   : > { %v1229_v36 = vadd.f32 %v1225_v10, %v1189_v9  ;;  %v1230_v13 = vadd.f32 %v1226_v12, %v1190_v11  ;;  %v1214_v14 = vpop.permute.xlu1 %1213  ;;  %v1216_v15 = vpop.permute.xlu0 %1215  ;;  %s1321_s26 = sshll.u32 %s2437_s11, 4  ;;  %s2712_s1 = sld [smem:[#allocation25_spill]]  ;;  %s2577_s26 = int_to_ptr.vmem [resolvable:$true] %s1321_s26 }
 0x2c2   : > { %v1223_v17 = vsel %vm1176_vm3, %v1202_v3, %v1214_v14  ;;  %v1224_v19 = vsel %vm1176_vm3, %v1204_v4, %v1216_v15  ;;  %s2713_s10 = sld [smem:[#allocation26_spill]]  ;;  %s2581_s11 = scalar_lea.sflag [#allocation13], %s1267_s0 }
 0x2c3   : > { %v1246_v20 = vpack.c.bf16 %v1229_v36, %v1229_v36  ;;  %v1247_v21 = vpack.c.bf16 %v1230_v13, %v1230_v13  ;;  %v1227_v22 = vmul.f32 %v1223_v17, %v2481_v34  ;;  %v1228_v23 = vmul.f32 %v1224_v19, %v2481_v34  ;;  %s1897_s15 = scalar_lea.vmem %s2569_s29, 256  ;;  %s2039_s20 = smov [#allocation12]  }
 0x2c4   : > { %p1898_p8 = scmp.ne.s32.totalorder %s2569_s29, %s1897_s15  ;;  %s1901_s23 = sshll.u32 %s2039_s20, 4  ;;  %s1902_s23 = int_to_ptr.vmem [resolvable:$false] %s1901_s23 }
 0x2c5   : > { %1250 = vst.msk [vmem:[%s501_s3] sm:$0xf] %vm1241_vm2, %v1246_v20  ;;  %1251 = vst.msk [vmem:[%s501_s3 + $0x4] sm:$0xf] %vm1241_vm2, %v1247_v21  ;;  %v1231_v25 = vadd.f32 %v1227_v22, %v1191_v16  ;;  %v1232_v24 = vadd.f32 %v1228_v23, %v1192_v18  ;;  %s1903_s24 = scalar_lea.vmem %s1902_s23, 512  ;;  %p1904_p6 = scmp.lt.s32.totalorder %s2569_s29, %s1902_s23 }
 0x2c6   : > { %p1899_p9 = pnand %p1898_p8, %p2709_p10  ;;  %p1905_p3 = scmp.lt.s32.totalorder %s1903_s24, %s1897_s15 }
 0x2c7   : > { %v1248_v26 = vpack.c.bf16 %v1231_v25, %v1231_v25  ;;  %v1249_v27 = vpack.c.bf16 %v1232_v24, %v1232_v24  ;;  %s2567_s14 = scalar_lea.hbm %s2712_s1, %s2500_s16 }
 0x2c8   : > { %s2575_s2 = scalar_lea.hbm %s2713_s10, %s2500_s16  ;;  %p1900_p4 = pneg %p1899_p9 }
 0x2c9   : > { %1252 = vst.msk [vmem:[%s501_s3 + $0x8] sm:$0xf] %vm1241_vm2, %v1248_v26  ;;  %1253 = vst.msk [vmem:[%s501_s3 + $0xc] sm:$0xf] %vm1241_vm2, %v1249_v27  ;;  %p1906_p1 = por %p1905_p3, %p1904_p6 }
 0x2cb   : > { %p1907_p12 = pnand %p1906_p1, %p1900_p4 }
 0x2cd   : > { %1910 = shalt.err (!%p1907_p12)
}
 0x2ce   : > { %s1911_s16 = scalar_lea.hbm %s2567_s14, 256  ;;  %s1915_s20 = scalar_lea.hbm %s2712_s1, 512 }
 0x2cf   : > { %p1912_p0 = scmp.ne.s32.totalorder %s2567_s14, %s1911_s16  ;;  %p1916_p11 = scmp.lt.u32.totalorder %s2567_s14, %s2712_s1 }
 0x2d0   : > { %p1917_p13 = scmp.lt.u32.totalorder %s1915_s20, %s1911_s16  ;;  %p1919_p8 = scmp.lt.u32.totalorder %s1911_s16, %s2567_s14 }
 0x2d1   : > { %p1913_p5 = pnand %p1912_p0, %p2709_p10 }
 0x2d2   : > { %p1918_p2 = por %p1917_p13, %p1916_p11 }
 0x2d3   : > { %p1914_p7 = pneg %p1913_p5 }
 0x2d4   : > { %p1920_p9 = por %p1919_p8, %p1918_p2 }
 0x2d6   : > { %p1921_p4 = pnand %p1920_p9, %p1914_p7 }
 0x2d8   : > { %1924 = shalt.err (!%p1921_p4)
}
 0x2d9   : > { %s2714_s15 = smov 64   ;;  %s1925_s28 = scalar_lea.vmem %s2577_s26, 256 }
 0x2da   : > { %1615 = dma.vmem_to_hbm [thread:$0]  (%p2709_p10), %s2569_s29, 256, %s2567_s14, %s2581_s11, %s2714_s15, %s2714_s15, %s2710_s9  }
 0x2db   : > { %p1926_p6 = scmp.ne.s32.totalorder %s2577_s26, %s1925_s28  ;;  %s2040_s24 = smov [#allocation14]  }
 0x2dc   : > { %s1929_s16 = sshll.u32 %s2040_s24, 4  ;;  %s1930_s16 = int_to_ptr.vmem [resolvable:$false] %s1929_s16 }
 0x2dd   : > { %p1927_p3 = pnand %p1926_p6, %p2709_p10  ;;  %s1931_s0 = scalar_lea.vmem %s1930_s16, 512 }
 0x2de   : > { %p1932_p12 = scmp.lt.s32.totalorder %s2577_s26, %s1930_s16  ;;  %p1933_p0 = scmp.lt.s32.totalorder %s1931_s0, %s1925_s28 }
 0x2df   : > { %p1928_p1 = pneg %p1927_p3 }
 0x2e0   : > { %p1934_p5 = por %p1933_p0, %p1932_p12 }
 0x2e2   : > { %p1935_p7 = pnand %p1934_p5, %p1928_p1 }
 0x2e4   : > { %1938 = shalt.err (!%p1935_p7)
}
 0x2e5   : > { %s1939_s29 = scalar_lea.hbm %s2575_s2, 256  ;;  %s1943_s20 = scalar_lea.hbm %s2713_s10, 512 }
 0x2e6   : > { %p1940_p11 = scmp.ne.s32.totalorder %s2575_s2, %s1939_s29  ;;  %p1944_p8 = scmp.lt.u32.totalorder %s2575_s2, %s2713_s10 }
 0x2e7   : > { %p1945_p9 = scmp.lt.u32.totalorder %s1943_s20, %s1939_s29  ;;  %p1947_p6 = scmp.lt.u32.totalorder %s1939_s29, %s2575_s2 }
 0x2e8   : > { %p1941_p13 = pnand %p1940_p11, %p2709_p10 }
 0x2e9   : > { %p1946_p4 = por %p1945_p9, %p1944_p8 }
 0x2ea   : > { %p1942_p2 = pneg %p1941_p13 }
 0x2eb   : > { %p1948_p3 = por %p1947_p6, %p1946_p4 }
 0x2ed   : > { %p1949_p1 = pnand %p1948_p3, %p1942_p2 }
 0x2ef   : > { %1952 = shalt.err (!%p1949_p1)
}
 0x2f0   : > { %1616 = dma.vmem_to_hbm [thread:$0]  (%p2709_p10), %s2577_s26, 256, %s2575_s2, %s2581_s11, %s2714_s15, %s2714_s15, %s2710_s9  }
 0x2f1 PF: > { %s1336_s28 = sand.u32 1, %s1999_s17   ;;  %p2715_p12 = scmp.ne.s32.totalorder %s2700_s13, 0 }
 0x2f2   : > { %p2716_p0 = scmp.ge.s32.totalorder %s2019_s22, 2  ;;  %s1337_s16 = scalar_lea.sflag [#allocation4], %s1336_s28 }
 0x2f4   : > { %p1638_p5 = pnand %p2716_p0, %p2715_p12 }
 0x2f6   : > { %1990 = dma.done.wait (!%p1638_p5), %s1337_s16, 256  }
 0x2f7   : > { %1992 = vsyncadd (!%p1638_p5), %s1337_s16, 4294967040  ;;  %s2717_s25 = sadd.s32 4294967294, %s2019_s22  }
 0x2f8   : > { %s1345_s0 = sand.u32 1, %s2717_s25  }
 0x2f9   : > { %s1346_s29 = scalar_lea.sflag [#allocation13], %s1345_s0 }
 0x2fa   : > { %1994 = dma.done.wait (!%p1638_p5), %s1346_s29, 512  }
 0x2fb   : > { %1996 = vsyncadd (!%p1638_p5), %s1346_s29, 4294966784  ;;  %s33_s22 = sadd.s32 1, %s2019_s22   ;;  %s2718_s17 = smov %s2003_s18 }
 0x2fc   : > { %p30_p10 = scmp.ge.s32.totalorder %s33_s22, 4   ;;  %s2719_s18 = smov %s2007_s19 }
 0x2fd   : > { %s2720_s19 = smov %s2274_s30  ;;  %s2721_s20 = smov %s2015_s21 }
 0x2fe   : > { %s2722_s21 = smov %s2724_s27  ;;  %32 = sbr.rel (!%p30_p10) target bundleno = 18 (0x12), region = 151 }
 0x305   :  { %1360 = vsyncpa [#allocation3], 1 }
 0x306   :  { %1362 = vsyncpa [#allocation3 + $0x1], 1 }
 0x307   :  { %1363 = vsyncpa [#allocation6], 1 }
 0x308   :  { %1364 = vsyncpa [#allocation9], 1 }
 0x309   :  { %1365 = vsyncpa [#allocation4], 1 }
 0x30a   :  { %1367 = vsyncpa [#allocation4 + $0x1], 1 }
 0x30b   :  { %1368 = vsyncpa [#allocation13], 1 }
 0x30c   :  { %1370 = vsyncpa [#allocation13 + $0x1], 1 }

// kernel: tpu_custom_call.1
= control target key start
LH: loop header
LB: loop body
LE: loop exit
PB: predicated region body
PF: predicated region fallthrough
CT: control target
= control target key end

     0   :  { %s2658_s0 = inlined_call_operand.hbm [shape: bf16[2,8,32], index: 0, kind: input, shape index: {}]   ;;  %s2659_s1 = inlined_call_operand.hbm [shape: f32[8,8], index: 1, kind: input, shape index: {}]   ;;  %s2660_s2 = inlined_call_operand.hbm [shape: f32[8,8], index: 2, kind: input, shape index: {}]   ;;  %s2661_s3 = inlined_call_operand.hbm [shape: bf16[32,32], index: 3, kind: input, shape index: {}]   ;;  %s2662_s4 = inlined_call_operand.vmem [shape: f32[1,32], index: 4, kind: input, shape index: {}]   ;;  %s2663_s5 = inlined_call_operand.vmem [shape: bf16[32,32], index: 5, kind: input, shape index: {}]   ;;  %s2664_s6 = inlined_call_operand.vmem [shape: f32[1,32], index: 6, kind: input, shape index: {}]   ;;  %s2665_s7 = inlined_call_operand.hbm [shape: bf16[32,32], index: 7, kind: input, shape index: {}]   ;;  %s2666_s8 = inlined_call_operand.vmem [shape: f32[1,32], index: 8, kind: input, shape index: {}]   ;;  %s2667_s9 = inlined_call_operand.hbm [shape: bf16[2,4,8,8], index: 9, kind: output, shape index: {0}]   ;;  %s2668_s10 = inlined_call_operand.hbm [shape: bf16[2,4,8,8], index: 10, kind: output, shape index: {1}]   ;;  %s2669_s11 = inlined_call_operand.hbm [shape: bf16[2,4,8,8], index: 11, kind: output, shape index: {2}]  }
   0x1   :  { %2682 = sst [smem:[#allocation20_spill]] %s2658_s0 }
   0x2   :  { %2683 = sst [smem:[#allocation21_spill]] %s2659_s1 }
   0x3   :  { %2684 = sst [smem:[#allocation22_spill]] %s2660_s2 }
   0x4   :  { %2685 = sst [smem:[#allocation23_spill]] %s2661_s3 }
   0x5   :  { %2686 = sst [smem:[#allocation24_spill]] %s2667_s9 }
   0x6   :  { %2687 = sst [smem:[#allocation25_spill]] %s2668_s10 }
   0x7   :  { %2688 = sst [smem:[#allocation26_spill]] %s2669_s11 }
   0x8   :  { %17 = vsyncpa [#allocation3], 0 }
   0x9   :  { %19 = vsyncpa [#allocation3 + $0x1], 0 }
   0xa   :  { %20 = vsyncpa [#allocation6], 0 }
   0xb   :  { %21 = vsyncpa [#allocation9], 0 }
   0xc   :  { %22 = vsyncpa [#allocation4], 0 }
   0xd   :  { %24 = vsyncpa [#allocation4 + $0x1], 0 }
   0xe   :  { %25 = vsyncpa [#allocation13], 0 }
   0xf   :  { %27 = vsyncpa [#allocation13 + $0x1], 0  ;;  %s2101_s17 = smov 0   ;;  %s2103_s18 = smov 0  }
  0x10   :  { %s2105_s19 = smov 0   ;;  %s2107_s20 = smov 0  }
  0x11   :  { %s2109_s21 = smov 0   ;;  %s2111_s22 = smov 0  }
  0x12 LB: > { %s2132_s23 = sadd.s32 4294967295, %s2019_s22   ;;  %p1514_p0 = scmp.ge.s32.totalorder %s2019_s22, 1  ;;  %s2019_s22 = sphi %s2111_s22, %s33_s22   ;;  %s2015_s21 = sphi %s2109_s21, %s2722_s21   ;;  %s2011_s20 = sphi %s2107_s20, %s2721_s20   ;;  %s2007_s19 = sphi %s2105_s19, %s2720_s19   ;;  %s2003_s18 = sphi %s2103_s18, %s2719_s18   ;;  %s1999_s17 = sphi %s2101_s17, %s2718_s17  }
  0x13   : > { %p2671_p1 = scmp.eq.s32.totalorder %s2132_s23, 0  ;;  %p340_p2 = scmp.lt.s32.totalorder %s2019_s22, 3 }
  0x14   : > { %s2021_s25 = smov [#allocation5]   ;;  %s2022_s27 = smov [#allocation8]  }
  0x15   : > { %p2137_p3 = pnand %p1514_p0, %p340_p2  ;;  %s355_s26 = sshll.u32 %s2021_s25, 4  ;;  %s356_s26 = int_to_ptr.vmem [resolvable:$true] %s355_s26 }
  0x16   : > { %s378_s28 = sshll.u32 %s2022_s27, 4  ;;  %s2023_s30 = smov [#allocation7]   ;;  %s2150_s28 = int_to_ptr.vmem [resolvable:$true] %s378_s28 }
  0x17   : > { %s2689_s24 = scalar_select %p2137_p3, 1, 0 }
  0x18   : > { %p1620_p5 = pneg %p2137_p3  ;;  %s2152_s12 = sshll.u32 %s2023_s30, 4  ;;  %s369_s12 = int_to_ptr.vmem [resolvable:$true] %s2152_s12 }
  0x19   : > { %s2691_s1 = sld [smem:[#allocation21_spill]] }
  0x1a   : > { %p2146_p6 = pnand %p1620_p5, %p2671_p1 }
  0x1c   : > { %p2162_p8 = pneg %p2146_p6 }
  0x1f   : > { %s1727_s15 = scalar_lea.hbm %s2691_s1, 128 }
  0x20   : > { %p1728_p7 = scmp.ne.s32.totalorder %s2691_s1, %s1727_s15  ;;  %p1734_p11 = scmp.lt.u32.totalorder %s1727_s15, %s2691_s1 }
  0x22   : > { %p1730_p9 = pnand %p2162_p8, %p1728_p7 }
  0x24   : > { %p1731_p10 = pneg %p1730_p9 }
  0x26   : > { %p1736_p12 = pnand %p1734_p11, %p1731_p10 }
  0x28   : > { %1739 = shalt.err (!%p1736_p12)
}
  0x29   : > { %s1740_s13 = scalar_lea.vmem %s356_s26, 128  ;;  %p1748_p5 = scmp.lt.s32.totalorder %s356_s26, %s356_s26 }
  0x2a   : > { %p1741_p13 = scmp.ne.s32.totalorder %s356_s26, %s1740_s13  ;;  %p1749_p4 = scmp.lt.s32.totalorder %s1740_s13, %s1740_s13 }
  0x2c   : > { %p1743_p0 = pnand %p1741_p13, %p2162_p8  ;;  %p1750_p1 = por %p1749_p4, %p1748_p5 }
  0x2e   : > { %p1744_p2 = pneg %p1743_p0 }
  0x30   : > { %p1751_p3 = pnand %p1750_p1, %p1744_p2 }
  0x32   : > { %1754 = shalt.err (!%p1751_p3)
}
  0x33   : > { %1623 = dma.hbm_to_vmem [thread:$0]  (!%p2146_p6), %s2691_s1, 128, %s356_s26, [#allocation6]  }
  0x34   : > { %s2693_s3 = sld [smem:[#allocation23_spill]] }
  0x3a   : > { %s1755_s25 = scalar_lea.hbm %s2693_s3, 256 }
  0x3b   : > { %p1756_p7 = scmp.ne.s32.totalorder %s2693_s3, %s1755_s25  ;;  %p1762_p1 = scmp.lt.u32.totalorder %s1755_s25, %s2693_s3 }
  0x3d   : > { %p1758_p9 = pnand %p1756_p7, %p2162_p8 }
  0x3f   : > { %p1759_p4 = pneg %p1758_p9 }
  0x41   : > { %p1764_p3 = pnand %p1762_p1, %p1759_p4 }
  0x43   : > { %1767 = shalt.err (!%p1764_p3)
}
  0x44   : > { %s1768_s26 = scalar_lea.vmem %s2150_s28, 256  ;;  %p1776_p13 = scmp.lt.s32.totalorder %s2150_s28, %s2150_s28 }
  0x45   : > { %p1769_p10 = scmp.ne.s32.totalorder %s2150_s28, %s1768_s26  ;;  %p1777_p0 = scmp.lt.s32.totalorder %s1768_s26, %s1768_s26 }
  0x47   : > { %p1771_p11 = pnand %p1769_p10, %p2162_p8  ;;  %p1778_p2 = por %p1777_p0, %p1776_p13 }
  0x49   : > { %p1772_p12 = pneg %p1771_p11 }
  0x4b   : > { %p1779_p5 = pnand %p1778_p2, %p1772_p12 }
  0x4d   : > { %1782 = shalt.err (!%p1779_p5)
}
  0x4e   : > { %s2675_s10 = smov 64   ;;  %s2025_s9 = smov 4  }
  0x4f   : > { %1629 = dma.hbm_to_vmem [thread:$0]  (!%p2146_p6), %s2693_s3, 256, %s2150_s28, [#allocation9], %s2675_s10, %s2675_s10, %s2025_s9  }
  0x50   : > { %s2694_s2 = sld [smem:[#allocation22_spill]] }
  0x56   : > { %s1783_s25 = scalar_lea.hbm %s2694_s2, 128 }
  0x57   : > { %p1784_p7 = scmp.ne.s32.totalorder %s2694_s2, %s1783_s25  ;;  %p1790_p1 = scmp.lt.u32.totalorder %s1783_s25, %s2694_s2 }
  0x59   : > { %p1786_p9 = pnand %p1784_p7, %p2162_p8 }
  0x5b   : > { %p1787_p4 = pneg %p1786_p9 }
  0x5d   : > { %p1792_p3 = pnand %p1790_p1, %p1787_p4 }
  0x5f   : > { %1795 = shalt.err (!%p1792_p3)
}
  0x60   : > { %s1796_s14 = scalar_lea.vmem %s369_s12, 128  ;;  %p1804_p13 = scmp.lt.s32.totalorder %s369_s12, %s369_s12 }
  0x61   : > { %p1797_p10 = scmp.ne.s32.totalorder %s369_s12, %s1796_s14  ;;  %p1805_p0 = scmp.lt.s32.totalorder %s1796_s14, %s1796_s14 }
  0x63   : > { %p1799_p11 = pnand %p1797_p10, %p2162_p8  ;;  %p1806_p2 = por %p1805_p0, %p1804_p13 }
  0x65   : > { %p1800_p12 = pneg %p1799_p11 }
  0x67   : > { %p1807_p5 = pnand %p1806_p2, %p1800_p12 }
  0x69   : > { %1810 = shalt.err (!%p1807_p5)
}
  0x6a   : > { %1626 = dma.hbm_to_vmem [thread:$0]  (!%p2146_p6), %s2694_s2, 128, %s369_s12, [#allocation6]  }
  0x6b   : > { %s2026_s1 = smov [#allocation10]   ;;  %s1811_s30 = scalar_lea.hbm %s2665_s7, 256 }
  0x6c   : > { %s400_s11 = sshll.u32 %s2026_s1, 4  ;;  %p1812_p7 = scmp.ne.s32.totalorder %s2665_s7, %s1811_s30  ;;  %s401_s11 = int_to_ptr.vmem [resolvable:$true] %s400_s11 }
  0x6d   : > { %p1818_p1 = scmp.lt.u32.totalorder %s1811_s30, %s2665_s7 }
  0x6e   : > { %p1814_p9 = pnand %p1812_p7, %p2162_p8 }
  0x70   : > { %p1815_p4 = pneg %p1814_p9 }
  0x72   : > { %p1820_p3 = pnand %p1818_p1, %p1815_p4 }
  0x74   : > { %1823 = shalt.err (!%p1820_p3)
}
  0x75   : > { %s1824_s12 = scalar_lea.vmem %s401_s11, 256  ;;  %p1832_p13 = scmp.lt.s32.totalorder %s401_s11, %s401_s11 }
  0x76   : > { %p1825_p10 = scmp.ne.s32.totalorder %s401_s11, %s1824_s12  ;;  %p1833_p0 = scmp.lt.s32.totalorder %s1824_s12, %s1824_s12 }
  0x78   : > { %p1827_p11 = pnand %p1825_p10, %p2162_p8  ;;  %p1834_p2 = por %p1833_p0, %p1832_p13 }
  0x7a   : > { %p1828_p12 = pneg %p1827_p11 }
  0x7c   : > { %p1835_p5 = pnand %p1834_p2, %p1828_p12 }
  0x7e   : > { %1838 = shalt.err (!%p1835_p5)
}
  0x7f   : > { %s2695_s28 = smov 64   ;;  %s2676_s29 = sadd.s32 4294967294, %s2019_s22  }
  0x80   : > { %1632 = dma.hbm_to_vmem [thread:$0]  (!%p2146_p6), %s2665_s7, 256, %s401_s11, [#allocation9], %s2695_s28, %s2695_s28, %s2025_s9  }
  0x81   : > { %s45_s27 = sadd.s32 1, %s2015_s21  ;;  %s54_s1 = sadd.s32 1, %s2007_s19 }
  0x82   : > { %p47_p8 = scmp.ge.s32.totalorder %s45_s27, 2  ;;  %p61_p7 = scmp.ne.s32.totalorder %s2007_s19, %s2003_s18 }
  0x83   : > { %p62_p9 = scmp.eq.s32.totalorder %s2019_s22, 0  ;;  %p67_p1 = scmp.ne.s32.totalorder %s2003_s18, %s1999_s17 }
  0x84   : > { %s2724_s27 = smov (%p47_p8, %s45_s27), 0  ;;  %p271_p6 = scmp.eq.s32.totalorder %s2132_s23, 1 }
  0x85   : > { %p2252_p4 = por %p62_p9, %p61_p7  ;;  %s49_s9 = ssub.s32 %s2015_s21, %s2724_s27 }
  0x86   : > { %p52_p3 = scmp.eq.s32.totalorder %s49_s9, 0  ;;  %p2697_p10 = scmp.eq.s32.totalorder %s2132_s23, 0 }
  0x87   : > { %p2267_p12 = por %p271_p6, %p61_p7  ;;  %p277_p13 = scmp.eq.s32.totalorder %s2676_s29, 1 }
  0x88   : > { %p2263_p11 = por %p2697_p10, %p67_p1  ;;  %p1651_p2 = scmp.lt.s32.totalorder %s2019_s22, 2 }
  0x89   : > { %s2699_s25 = scalar_select %p2267_p12, 1, 0 }
  0x8a   : > { %s2274_s30 = scalar_select %p52_p3, %s2007_s19, %s54_s1  }
  0x8b   : > { %p2276_p0 = por %p277_p13, %p67_p1  ;;  %s417_s26 = sand.u32 1, %s2007_s19  }
  0x8c   : > { %s1521_s14 = sshll.u32 %s2015_s21, 6  ;;  %s1520_s12 = sshll.u32 %s417_s26, 2 }
  0x8d   : > { %s2700_s13 = scalar_select %p2276_p0, 1, 0 }
  0x8e   : > { %s2701_s0 = sld [smem:[#allocation20_spill]]  ;;  %s421_s9 = scalar_lea.vmem [#allocation2], %s1520_s12 }
  0x8f   : > { %s429_s1 = sshll.u32 %s421_s9, 4  ;;  %p2290_p5 = pnand %p1651_p2, %p2252_p4  ;;  %s2294_s1 = int_to_ptr.vmem [resolvable:$true] %s429_s1 }
  0x90   : > { %s418_s2 = scalar_lea.sflag [#allocation3], %s417_s26 }
  0x91   : > { %p1841_p7 = pneg %p2290_p5 }
  0x94   : > { %s2286_s16 = scalar_lea.hbm %s2701_s0, %s1521_s14  ;;  %s1844_s15 = scalar_lea.hbm %s2701_s0, 128 }
  0x95   : > { %s1839_s3 = scalar_lea.hbm %s2286_s16, 64  ;;  %p1845_p4 = scmp.lt.u32.totalorder %s2286_s16, %s2701_s0 }
  0x96   : > { %p1840_p8 = scmp.ne.s32.totalorder %s2286_s16, %s1839_s3  ;;  %p1846_p6 = scmp.lt.u32.totalorder %s1844_s15, %s1839_s3 }
  0x97   : > { %p1848_p10 = scmp.lt.u32.totalorder %s1839_s3, %s2286_s16 }
  0x98   : > { %p1842_p9 = pnand %p1841_p7, %p1840_p8  ;;  %p1847_p3 = por %p1846_p6, %p1845_p4 }
  0x9a   : > { %p1843_p1 = pneg %p1842_p9  ;;  %p1849_p13 = por %p1848_p10, %p1847_p3 }
  0x9c   : > { %p1850_p2 = pnand %p1849_p13, %p1843_p1 }
  0x9e   : > { %1853 = shalt.err (!%p1850_p2)
}
  0x9f   : > { %s1854_s26 = scalar_lea.vmem %s2294_s1, 64  ;;  %s2027_s9 = smov [#allocation2]  }
  0xa0   : > { %p1855_p8 = scmp.ne.s32.totalorder %s2294_s1, %s1854_s26  ;;  %s1859_s14 = sshll.u32 %s2027_s9, 4  ;;  %s1860_s14 = int_to_ptr.vmem [resolvable:$false] %s1859_s14 }
  0xa1   : > { %s1861_s12 = scalar_lea.vmem %s1860_s14, 128  ;;  %p1862_p12 = scmp.lt.s32.totalorder %s2294_s1, %s1860_s14 }
  0xa2   : > { %p1857_p9 = pnand %p1855_p8, %p1841_p7  ;;  %p1863_p4 = scmp.lt.s32.totalorder %s1861_s12, %s1854_s26 }
  0xa4   : > { %p1858_p0 = pneg %p1857_p9  ;;  %p1864_p6 = por %p1863_p4, %p1862_p12 }
  0xa6   : > { %p1865_p3 = pnand %p1864_p6, %p1858_p0 }
  0xa8   : > { %1868 = shalt.err (!%p1865_p3)
}
  0xa9   : > { %1636 = dma.hbm_to_vmem [thread:$0]  (!%p2290_p5), %s2286_s16, 64, %s2294_s1, %s418_s2  }
  0xaa   : > { %p2703_p1 = scmp.ne.s32.totalorder %s2689_s24, 0 }
  0xab   : > { %s2324_s3 = sand.u32 (!%p2703_p1), 1, %s2003_s18  }
  0xac   : > { %438 = sbr.rel (%p2703_p1) target bundleno = 753 (0x2f1), region = 56  ;;  %s1523_s15 = sshll.u32 (!%p2703_p1), %s2324_s3, 2 }
  0xad   : > { %s441_s28 = scalar_lea.sflag (!%p2703_p1), [#allocation3], %s2324_s3  ;;  %s444_s10 = scalar_lea.vmem (!%p2703_p1), [#allocation2], %s1523_s15 }
  0xb3   : > { %1978 = dma.done.wait (%p2263_p11), %s441_s28, 64  }
  0xb4   : > { %1980 = vsyncadd (%p2263_p11), %s441_s28, 4294967232  ;;  %p2704_p12 = scmp.eq.s32.totalorder %s2132_s23, 0 }
  0xb6   : > { %1982 = dma.done.wait (%p2704_p12), [#allocation6], 256   ;;  %p2705_p0 = pmov %p2704_p12 }
  0xb8   : > { %1984 = vsyncadd (%p2705_p0), [#allocation6], 4294967040  ;;  %p2706_p5 = pmov %p2705_p0 }
  0xb9   : > { %p2707_p7 = pmov %p2705_p0 }
  0xba   : > { %1986 = dma.done.wait (%p2706_p5), [#allocation9], 512  }
  0xbb   : > { %1988 = vsyncadd (%p2707_p7), [#allocation9], 4294966784  ;;  %v2028_v0 = vmov 0.0   ;;  %vm2029_vm0 = vmmov 0   ;;  %v1721_v1 = vld [vmem:[#allocation8] sm:$0xff]   ;;  %v1722_v2 = vld [vmem:[#allocation8 + $0x8] sm:$0xff]   ;;  %v721_v28 = vlaneseq }
  0xbc   : > { %1572 = vmatprep.subr.bf16.mxu0 %v2028_v0  ;;  %1580 = vmatprep.subr.bf16.mxu1 %v2028_v0  ;;  %v1723_v3 = vld [vmem:[%s2663_s5] sm:$0xff]   ;;  %v1724_v4 = vld [vmem:[%s2663_s5 + $0x8] sm:$0xff]   ;;  %v510_v5 = vld [vmem:[%s444_s10] sm:$0xf]  ;;  %vm534_vm1 = vcmask 261120   ;;  %s2030_s14 = smov 104  }
  0xbd   : > { %1576 = vmatprep.mubr.msk.bf16.mxu0 %vm2029_vm0, %v2028_v0  ;;  %1584 = vmatprep.mubr.msk.bf16.mxu1 %vm2029_vm0, %v2028_v0  ;;  %v1725_v6 = vld [vmem:[#allocation10] sm:$0xff]   ;;  %v1726_v7 = vld [vmem:[#allocation10 + $0x8] sm:$0xff]   ;;  %s2031_s12 = smov 120   ;;  %s2032_s15 = smov 112   ;;  %v2033_v26 = vmov 1983009808  }
  0xbe   : > { %1573 = vmatpush3.bf16.msra.mxu0 %v1721_v1  ;;  %1581 = vmatpush3.bf16.msra.mxu1 %v1723_v3  ;;  %v1531_v8 = vld [vmem:[%s2662_s4] ss:$0 sm:$0xff]  ;;  %v719_v27 = vunpack.c.l.s4 %v2033_v26  ;;  %v2034_v29 = vmov 1934713408   ;;  %v722_v32 = vshrl.u32 %v721_v28, 7  ;;  %s2035_s2 = smov 124  }
  0xbf   : > { %1574 = vmatprep.subr.bf16.mxu0 %v2028_v0  ;;  %1582 = vmatprep.subr.bf16.mxu1 %v2028_v0  ;;  %v1535_v10 = vld [vmem:[%s2664_s6] ss:$0 sm:$0xff]  ;;  %v751_v30 = vunpack.c.l.s4 %v2034_v29  ;;  %s2426_s24 = sshll.u32 %s2324_s3, 4  ;;  %vm1241_vm2 = vcmask 60416   ;;  %s2678_s29 = smov 4   ;;  %vm1176_vm3 = vcmask 31744  }
  0xc0   : > { %v1539_v20 = vld [vmem:[%s2666_s8] ss:$0 sm:$0xff]  ;;  %v720_v31 = vunpack.c.0.s8 %v719_v27  ;;  %s2437_s11 = scalar_lea.vmem [#allocation14], %s2426_s24  ;;  %s2500_s16 = sshll.u32 %s2011_s20, 8 }
  0xc1   : > { %v752_v35 = vunpack.c.0.s8 %v751_v30  ;;  %s494_s1 = scalar_lea.vmem [#allocation11], %s2426_s24  ;;  %p2709_p10 = scmp.ne.s32.totalorder %s2699_s25, 0 }
  0xc2   : > { %1575 = vmatpush3.bf16.msra.mxu0 %v1722_v2  ;;  %1583 = vmatpush3.bf16.msra.mxu1 %v1724_v4  ;;  %v2363_v36 = vsub.s32 %v720_v31, %v722_v32  ;;  %s1287_s26 = sshll.u32 %s494_s1, 4  ;;  %s2037_s10 = smov [#allocation11]   ;;  %s2511_s26 = int_to_ptr.vmem [resolvable:$true] %s1287_s26 }
  0xc3   : > { %1588 = vmatprep.subr.bf16.mxu0 %v2028_v0  ;;  %v2365_v43 = vsub.s32 %v752_v35, %v722_v32  ;;  %s1869_s28 = scalar_lea.vmem %s2511_s26, 256 }
  0xc4   : > { %p1870_p11 = scmp.ne.s32.totalorder %s2511_s26, %s1869_s28 }
  0xc5   : > { %1577 = vmatmul.mubr.msk.bf16.vlgmr.msra.gmra.mrb[0].mxu0 %vm534_vm1, %v510_v5  ;;  %1585 = vmatmul.mubr.msk.bf16.vlgmr.msra.gmra.mrb[0].mxu1 %vm534_vm1, %v510_v5 }
  0xc6   : > { %1589 = vmatpush3.bf16.msra.mxu0 %v1725_v6  ;;  %1592 = vmatprep.mubr.msk.bf16.mxu0 %vm2029_vm0, %v2028_v0  ;;  %p1871_p13 = pnand %p1870_p11, %p2709_p10 }
  0xc7   : > { %1590 = vmatprep.subr.bf16.mxu0 %v2028_v0 }
  0xc8   : > { %p1872_p2 = pneg %p1871_p13 }
  0xca   : > { %1591 = vmatpush3.bf16.msra.mxu0 %v1726_v7 }
  0xcd   : > { %1593 = vmatmul.mubr.msk.bf16.vlgmr.msra.gmra.mrb[4].mxu0 %vm534_vm1, %v510_v5 }
 0x198   : > { %v572_v9 = vpop.f32.mrb[0].mxu0  ;;  %v635_v14 = vpop.f32.mrb[0].mxu1 }
 0x199   : > { %v573_v11 = vadd.f32 %v1531_v8, %v572_v9  ;;  %v1578_v12 = vpop.f32.mrb[1].mxu0  ;;  %v636_v16 = vadd.f32 %v1535_v10, %v635_v14  ;;  %v1586_v17 = vpop.f32.mrb[1].mxu1 }
 0x19a   : > { %v575_v13 = vpop.f32.mrb[2].mxu0  ;;  %v638_v18 = vpop.f32.mrb[2].mxu1 }
 0x19b   : > { %713 = vrot.lane.b32.xlu1 %v573_v11, %s2030_s14  ;;  %707 = vrot.lane.b32.xlu0 %v573_v11, %s2031_s12  ;;  %v1579_v15 = vpop.f32.mrb[3].mxu0  ;;  %v1587_v19 = vpop.f32.mrb[3].mxu1 }
 0x19f   : > { %853 = vrot.lane.b32.xlu1 %v636_v16, %s2031_s12  ;;  %710 = vrot.lane.b32.xlu0 %v573_v11, %s2032_s15 }
 0x1a0   : > { %v698_v21 = vpop.f32.mrb[4].mxu0 }
 0x1a1   : > { %v1594_v22 = vpop.f32.mrb[5].mxu0  ;;  %v2358_v24 = vadd.f32 %v1539_v20, %v698_v21 }
 0x1a2   : > { %v701_v23 = vpop.f32.mrb[6].mxu0 }
 0x1a3   : > { %859 = vrot.lane.b32.xlu1 %v636_v16, %s2030_s14  ;;  %856 = vrot.lane.b32.xlu0 %v636_v16, %s2032_s15  ;;  %v1595_v25 = vpop.f32.mrb[7].mxu0 }
 0x1a7   : > { %999 = vrot.lane.b32.xlu0 %v2358_v24, %s2031_s12  ;;  %1002 = vrot.lane.b32.xlu1 %v2358_v24, %s2032_s15  ;;  %s2708_s12 = sld [smem:[#allocation24_spill]] }
 0x1ab   : > { %1005 = vrot.lane.b32.xlu0 %v2358_v24, %s2030_s14 }
 0x1ad   : > { %s2509_s15 = scalar_lea.hbm %s2708_s12, %s2500_s16 }
 0x20d   : > { %v714_v33 = vpop.permute.xlu1 %713  ;;  %v708_v34 = vpop.permute.xlu0 %707 }
 0x20e   : > { %v732_v37 = vcombine.low %v708_v34, %v714_v33  ;;  %v733_v38 = vcombine.high %v708_v34, %v714_v33 }
 0x210   : > { %v740_v44 = vrot.slane %v732_v37, %v2363_v36  ;;  %v747_v45 = vrot.slane %v733_v38, %v2363_v36 }
 0x211   : > { %v854_v39 = vpop.permute.xlu1 %853  ;;  %v711_v40 = vpop.permute.xlu0 %710 }
 0x212   : > { %v716_v41 = vcombine.low %v573_v11, %v711_v40  ;;  %v717_v42 = vcombine.high %v573_v11, %v711_v40 }
 0x214   : > { %v724_v46 = vrot.slane %v716_v41, %v2363_v36  ;;  %v731_v47 = vrot.slane %v717_v42, %v2363_v36 }
 0x215   : > { %v860_v48 = vpop.permute.xlu1 %859  ;;  %v857_v49 = vpop.permute.xlu0 %856 }
 0x216   : > { %v748_v50 = vcombine.low %v724_v46, %v740_v44  ;;  %v749_v51 = vcombine.high %v724_v46, %v740_v44  ;;  %v764_v52 = vcombine.low %v731_v47, %v747_v45  ;;  %v765_v53 = vcombine.high %v731_v47, %v747_v45 }
 0x217   : > { %v878_v54 = vcombine.low %v854_v39, %v860_v48  ;;  %v879_v55 = vcombine.high %v854_v39, %v860_v48  ;;  %v862_v56 = vcombine.low %v636_v16, %v857_v49  ;;  %v863_v57 = vcombine.high %v636_v16, %v857_v49 }
 0x218   : > { %v756_v58 = vrot.slane %v748_v50, %v2365_v43  ;;  %v763_v59 = vrot.slane %v749_v51, %v2365_v43  ;;  %v772_v60 = vrot.slane %v764_v52, %v2365_v43  ;;  %v779_v61 = vrot.slane %v765_v53, %v2365_v43 }
 0x219   : > { %v886_v62 = vrot.slane %v878_v54, %v2363_v36  ;;  %v893_v63 = vrot.slane %v879_v55, %v2363_v36  ;;  %v870_v0 = vrot.slane %v862_v56, %v2363_v36  ;;  %v877_v1 = vrot.slane %v863_v57, %v2363_v36  ;;  %v1000_v2 = vpop.permute.xlu0 %999  ;;  %v1003_v3 = vpop.permute.xlu1 %1002 }
 0x21a   : > { %v784_v4 = vcombine.low %v756_v58, %v763_v59  ;;  %v1543_v5 = vcombine.high %v756_v58, %v763_v59  ;;  %v800_v6 = vcombine.low %v772_v60, %v779_v61  ;;  %v1544_v7 = vcombine.high %v772_v60, %v779_v61 }
 0x21b   : > { %v894_v8 = vcombine.low %v870_v0, %v886_v62  ;;  %v895_v9 = vcombine.high %v870_v0, %v886_v62  ;;  %v910_v10 = vcombine.low %v877_v1, %v893_v63  ;;  %v911_v11 = vcombine.high %v877_v1, %v893_v63 }
 0x21c   : > { %v1008_v12 = vcombine.low %v2358_v24, %v1003_v3  ;;  %v1009_v13 = vcombine.high %v2358_v24, %v1003_v3  ;;  %v791_v17 = vrot.slane %v784_v4, %v2363_v36  ;;  %v799_v18 = vrot.slane %v1543_v5, %v2363_v36 }
 0x21d   : > { %v902_v14 = vrot.slane %v894_v8, %v2365_v43  ;;  %v909_v15 = vrot.slane %v895_v9, %v2365_v43  ;;  %v1006_v16 = vpop.permute.xlu0 %1005  ;;  %v807_v24 = vrot.slane %v800_v6, %v2363_v36  ;;  %v815_v26 = vrot.slane %v1544_v7, %v2363_v36 }
 0x21e   : > { %v1024_v19 = vcombine.low %v1000_v2, %v1006_v16  ;;  %v1025_v20 = vcombine.high %v1000_v2, %v1006_v16  ;;  %v1016_v21 = vrot.slane %v1008_v12, %v2363_v36  ;;  %v1023_v22 = vrot.slane %v1009_v13, %v2363_v36 }
 0x21f   : > { %v918_v27 = vrot.slane %v910_v10, %v2365_v43  ;;  %v925_v28 = vrot.slane %v911_v11, %v2365_v43  ;;  %v930_v29 = vcombine.low %v902_v14, %v909_v15  ;;  %v816_v30 = vcombine.low %v791_v17, %v799_v18 }
 0x220   : > { %v1032_v23 = vrot.slane %v1024_v19, %v2363_v36  ;;  %v1039_v25 = vrot.slane %v1025_v20, %v2363_v36  ;;  %v832_v37 = vcombine.low %v807_v24, %v815_v26  ;;  %v817_v38 = vcombine.high %v791_v17, %v799_v18 }
 0x221   : > { %v824_v35 = vrot.slane %v816_v30, %v2365_v43  ;;  %v833_v39 = vcombine.high %v807_v24, %v815_v26  ;;  %v1545_v45 = vcombine.high %v902_v14, %v909_v15  ;;  %v946_v46 = vcombine.low %v918_v27, %v925_v28 }
 0x222   : > { %v1040_v31 = vcombine.low %v1016_v21, %v1032_v23  ;;  %v1041_v32 = vcombine.high %v1016_v21, %v1032_v23  ;;  %v1056_v33 = vcombine.low %v1023_v22, %v1039_v25  ;;  %v1057_v34 = vcombine.high %v1023_v22, %v1039_v25 }
 0x223   : > { %v1546_v47 = vcombine.high %v918_v27, %v925_v28  ;;  %v840_v48 = vrot.slane %v832_v37, %v2365_v43  ;;  %v831_v55 = vrot.slane %v817_v38, %v2365_v43  ;;  %v847_v56 = vrot.slane %v833_v39, %v2365_v43 }
 0x224   : > { %v1048_v40 = vrot.slane %v1040_v31, %v2365_v43  ;;  %v1055_v41 = vrot.slane %v1041_v32, %v2365_v43  ;;  %v1064_v42 = vrot.slane %v1056_v33, %v2365_v43  ;;  %v1071_v44 = vrot.slane %v1057_v34, %v2365_v43  ;;  %v2479_v33 = vld [vmem:[#allocation5] sm:$0xff]  ;;  %v2481_v34 = vld [vmem:[#allocation7] sm:$0xff] }
 0x225   : > { %v2399_v53 = vcombine.low %v824_v35, %v840_v48  ;;  %v2401_v54 = vcombine.high %v824_v35, %v840_v48  ;;  %v937_v61 = vrot.slane %v930_v29, %v2363_v36  ;;  %v945_v62 = vrot.slane %v1545_v45, %v2363_v36 }
 0x226   : > { %v1076_v49 = vcombine.low %v1048_v40, %v1055_v41  ;;  %v1547_v50 = vcombine.high %v1048_v40, %v1055_v41  ;;  %v1092_v51 = vcombine.low %v1064_v42, %v1071_v44  ;;  %v1548_v52 = vcombine.high %v1064_v42, %v1071_v44 }
 0x227   : > { %1152 = vrot.lane.b32.xlu1 %v2399_v53, %s2035_s2  ;;  %1154 = vrot.lane.b32.xlu0 %v2401_v54, %s2035_s2  ;;  %v2415_v3 = vcombine.low %v831_v55, %v847_v56  ;;  %v2417_v4 = vcombine.high %v831_v55, %v847_v56  ;;  %v953_v5 = vrot.slane %v946_v46, %v2363_v36 }
 0x228   : > { %v1083_v57 = vrot.slane %v1076_v49, %v2363_v36  ;;  %v1091_v58 = vrot.slane %v1547_v50, %v2363_v36  ;;  %v1099_v59 = vrot.slane %v1092_v51, %v2363_v36  ;;  %v1107_v60 = vrot.slane %v1548_v52, %v2363_v36 }
 0x229   : > { %v961_v6 = vrot.slane %v1546_v47, %v2363_v36  ;;  %v962_v14 = vcombine.low %v937_v61, %v945_v62  ;;  %v963_v22 = vcombine.high %v937_v61, %v945_v62  ;;  %v1144_v40 = vmul.f32 %v2399_v53, %v2479_v33 }
 0x22a   : > { %v1108_v63 = vcombine.low %v1083_v57, %v1091_v58  ;;  %v1109_v0 = vcombine.high %v1083_v57, %v1091_v58  ;;  %v1124_v1 = vcombine.low %v1099_v59, %v1107_v60  ;;  %v1125_v2 = vcombine.high %v1099_v59, %v1107_v60 }
 0x22b   : > { %1156 = vrot.lane.b32.xlu1 %v2415_v3, %s2035_s2  ;;  %1158 = vrot.lane.b32.xlu0 %v2417_v4, %s2035_s2  ;;  %v978_v15 = vcombine.low %v953_v5, %v961_v6  ;;  %v970_v20 = vrot.slane %v962_v14, %v2365_v43  ;;  %v979_v23 = vcombine.high %v953_v5, %v961_v6 }
 0x22c   : > { %v1116_v7 = vrot.slane %v1108_v63, %v2365_v43  ;;  %v1123_v8 = vrot.slane %v1109_v0, %v2365_v43  ;;  %v1132_v9 = vrot.slane %v1124_v1, %v2365_v43  ;;  %v1139_v10 = vrot.slane %v1125_v2, %v2365_v43 }
 0x22d   : > { %v986_v21 = vrot.slane %v978_v15, %v2365_v43  ;;  %v977_v26 = vrot.slane %v963_v22, %v2365_v43  ;;  %v993_v27 = vrot.slane %v979_v23, %v2365_v43  ;;  %v1145_v42 = vmul.f32 %v2401_v54, %v2479_v33 }
 0x22e   : > { %v1140_v11 = vcombine.low %v1116_v7, %v1132_v9  ;;  %v1141_v12 = vcombine.high %v1116_v7, %v1132_v9  ;;  %v1142_v36 = vcombine.low %v1123_v8, %v1139_v10  ;;  %v1143_v13 = vcombine.high %v1123_v8, %v1139_v10 }
 0x22f   : > { %1164 = vrot.lane.b32.xlu1 %v2399_v53, %s2678_s29  ;;  %1166 = vrot.lane.b32.xlu0 %v2401_v54, %s2678_s29  ;;  %v2453_v25 = vcombine.low %v970_v20, %v986_v21  ;;  %v2455_v24 = vcombine.high %v970_v20, %v986_v21  ;;  %v2463_v28 = vcombine.low %v977_v26, %v993_v27 }
 0x230   : > { %v1254_v16 = vpack.c.bf16 %v1140_v11, %v1140_v11  ;;  %v1255_v17 = vpack.c.bf16 %v1141_v12, %v1141_v12  ;;  %v1256_v18 = vpack.c.bf16 %v1142_v36, %v1142_v36  ;;  %v1257_v19 = vpack.c.bf16 %v1143_v13, %v1143_v13 }
 0x231   : > { %v2465_v29 = vcombine.high %v977_v26, %v993_v27  ;;  %v1146_v49 = vmul.f32 %v2415_v3, %v2479_v33  ;;  %v1147_v51 = vmul.f32 %v2417_v4, %v2479_v33 }
 0x232   : > { %1258 = vst.msk [vmem:[%s2437_s11] sm:$0xf] %vm1241_vm2, %v1254_v16  ;;  %1259 = vst.msk [vmem:[%s2437_s11 + $0x4] sm:$0xf] %vm1241_vm2, %v1255_v17 }
 0x233   : > { %1260 = vst.msk [vmem:[%s2437_s11 + $0x8] sm:$0xf] %vm1241_vm2, %v1256_v18  ;;  %1261 = vst.msk [vmem:[%s2437_s11 + $0xc] sm:$0xf] %vm1241_vm2, %v1257_v19  ;;  %1168 = vrot.lane.b32.xlu1 %v2415_v3, %s2678_s29  ;;  %1170 = vrot.lane.b32.xlu0 %v2417_v4, %s2678_s29 }
 0x237   : > { %1197 = vrot.lane.b32.xlu1 %v2453_v25, %s2035_s2  ;;  %1199 = vrot.lane.b32.xlu0 %v2455_v24, %s2035_s2 }
 0x23b   : > { %1201 = vrot.lane.b32.xlu1 %v2463_v28, %s2035_s2  ;;  %1203 = vrot.lane.b32.xlu0 %v2465_v29, %s2035_s2  ;;  %s1873_s2 = sshll.u32 %s2037_s10, 4  ;;  %s1874_s2 = int_to_ptr.vmem [resolvable:$false] %s1873_s2 }
 0x23c   : > { %s1875_s9 = scalar_lea.vmem %s1874_s2, 512  ;;  %p1876_p8 = scmp.lt.s32.totalorder %s2511_s26, %s1874_s2 }
 0x23d   : > { %p1877_p9 = scmp.lt.s32.totalorder %s1875_s9, %s1869_s28 }
 0x23f   : > { %1209 = vrot.lane.b32.xlu1 %v2453_v25, %s2678_s29  ;;  %1211 = vrot.lane.b32.xlu0 %v2455_v24, %s2678_s29  ;;  %p1878_p4 = por %p1877_p9, %p1876_p8 }
 0x241   : > { %p1879_p6 = pnand %p1878_p4, %p1872_p2 }
 0x243   : > { %1213 = vrot.lane.b32.xlu1 %v2463_v28, %s2678_s29  ;;  %1215 = vrot.lane.b32.xlu0 %v2465_v29, %s2678_s29 }
 0x299   : > { %v1153_v43 = vpop.permute.xlu1 %1152  ;;  %v1155_v30 = vpop.permute.xlu0 %1154 }
 0x29d   : > { %v1157_v31 = vpop.permute.xlu1 %1156  ;;  %v1159_v32 = vpop.permute.xlu0 %1158 }
 0x2a1   : > { %v1165_v35 = vpop.permute.xlu1 %1164  ;;  %v1167_v37 = vpop.permute.xlu0 %1166 }
 0x2a2   : > { %v1177_v38 = vsel %vm1176_vm3, %v1153_v43, %v1165_v35  ;;  %v1178_v39 = vsel %vm1176_vm3, %v1155_v30, %v1167_v37 }
 0x2a3   : > { %v1181_v41 = vmul.f32 %v1177_v38, %v2481_v34  ;;  %v1182_v44 = vmul.f32 %v1178_v39, %v2481_v34 }
 0x2a5   : > { %v1185_v45 = vadd.f32 %v1181_v41, %v1144_v40  ;;  %v1186_v46 = vadd.f32 %v1182_v44, %v1145_v42  ;;  %v1169_v47 = vpop.permute.xlu1 %1168  ;;  %v1171_v48 = vpop.permute.xlu0 %1170 }
 0x2a6   : > { %v1179_v50 = vsel %vm1176_vm3, %v1157_v31, %v1169_v47  ;;  %v1180_v52 = vsel %vm1176_vm3, %v1159_v32, %v1171_v48 }
 0x2a7   : > { %v1233_v53 = vmul.f32 0.5100697, %v1185_v45  ;;  %v1234_v54 = vmul.f32 0.5100697, %v1186_v46  ;;  %v1183_v55 = vmul.f32 %v1179_v50, %v2481_v34  ;;  %v1184_v56 = vmul.f32 %v1180_v52, %v2481_v34 }
 0x2a9   : > { %v1237_v57 = vpack.c.bf16 %v1233_v53, %v1233_v53  ;;  %v1238_v58 = vpack.c.bf16 %v1234_v54, %v1234_v54  ;;  %v1187_v59 = vadd.f32 %v1183_v55, %v1146_v49  ;;  %v1188_v60 = vadd.f32 %v1184_v56, %v1147_v51  ;;  %v1198_v61 = vpop.permute.xlu1 %1197  ;;  %v1200_v62 = vpop.permute.xlu0 %1199 }
 0x2ab   : > { %1242 = vst.msk [vmem:[%s494_s1] sm:$0xf] %vm1241_vm2, %v1237_v57  ;;  %1243 = vst.msk [vmem:[%s494_s1 + $0x4] sm:$0xf] %vm1241_vm2, %v1238_v58  ;;  %v1235_v63 = vmul.f32 0.5100697, %v1187_v59 }
 0x2ac   : > { %v1236_v0 = vmul.f32 0.5100697, %v1188_v60 }
 0x2ad   : > { %v1239_v1 = vpack.c.bf16 %v1235_v63, %v1235_v63  ;;  %v1202_v3 = vpop.permute.xlu1 %1201  ;;  %v1204_v4 = vpop.permute.xlu0 %1203 }
 0x2ae   : > { %v1240_v2 = vpack.c.bf16 %v1236_v0, %v1236_v0 }
 0x2af   : > { %1244 = vst.msk [vmem:[%s494_s1 + $0x8] sm:$0xf] %vm1241_vm2, %v1239_v1 }
 0x2b0   : > { %1245 = vst.msk [vmem:[%s494_s1 + $0xc] sm:$0xf] %vm1241_vm2, %v1240_v2 }
 0x2b1   : > { %1882 = shalt.err (!%p1879_p6)
}
 0x2b2   : > { %s1883_s1 = scalar_lea.hbm %s2509_s15, 256  ;;  %s1887_s10 = scalar_lea.hbm %s2708_s12, 512 }
 0x2b3   : > { %p1884_p3 = scmp.ne.s32.totalorder %s2509_s15, %s1883_s1  ;;  %p1888_p0 = scmp.lt.u32.totalorder %s2509_s15, %s2708_s12 }
 0x2b4   : > { %p1889_p5 = scmp.lt.u32.totalorder %s1887_s10, %s1883_s1  ;;  %p1891_p11 = scmp.lt.u32.totalorder %s1883_s1, %s2509_s15 }
 0x2b5   : > { %p1885_p1 = pnand %p1884_p3, %p2709_p10 }
 0x2b6   : > { %p1890_p7 = por %p1889_p5, %p1888_p0 }
 0x2b7   : > { %p1886_p12 = pneg %p1885_p1 }
 0x2b8   : > { %p1892_p13 = por %p1891_p11, %p1890_p7 }
 0x2ba   : > { %p1893_p2 = pnand %p1892_p13, %p1886_p12 }
 0x2bc   : > { %1896 = shalt.err (!%p1893_p2)
}
 0x2bd   : > { %s2680_s28 = smov 64   ;;  %s2710_s9 = smov 4   ;;  %v1210_v5 = vpop.permute.xlu1 %1209  ;;  %v1212_v6 = vpop.permute.xlu0 %1211  ;;  %v1189_v9 = vmul.f32 %v2453_v25, %v2479_v33  ;;  %v1190_v11 = vmul.f32 %v2455_v24, %v2479_v33  ;;  %v1191_v16 = vmul.f32 %v2463_v28, %v2479_v33  ;;  %v1192_v18 = vmul.f32 %v2465_v29, %v2479_v33 }
 0x2be   : > { %s2711_s0 = scalar_lea.sflag [#allocation4], %s2324_s3  ;;  %v1221_v7 = vsel %vm1176_vm3, %v1198_v61, %v1210_v5  ;;  %v1222_v8 = vsel %vm1176_vm3, %v1200_v62, %v1212_v6  ;;  %s501_s3 = scalar_lea.vmem [#allocation12], %s2426_s24 }
 0x2bf   : > { %1614 = dma.vmem_to_hbm [thread:$0]  (%p2709_p10), %s2511_s26, 256, %s2509_s15, %s2711_s0, %s2680_s28, %s2680_s28, %s2710_s9   ;;  %v1225_v10 = vmul.f32 %v1221_v7, %v2481_v34  ;;  %v1226_v12 = vmul.f32 %v1222_v8, %v2481_v34 }
 0x2c0   : > { %s1267_s0 = sand.u32 1, %s2132_s23   ;;  %s1304_s29 = sshll.u32 %s501_s3, 4  ;;  %s2569_s29 = int_to_ptr.vmem [resolvable:$true] %s1304_s29 }
 0x2c1   : > { %v1229_v36 = vadd.f32 %v1225_v10, %v1189_v9  ;;  %v1230_v13 = vadd.f32 %v1226_v12, %v1190_v11  ;;  %v1214_v14 = vpop.permute.xlu1 %1213  ;;  %v1216_v15 = vpop.permute.xlu0 %1215  ;;  %s1321_s26 = sshll.u32 %s2437_s11, 4  ;;  %s2712_s1 = sld [smem:[#allocation25_spill]]  ;;  %s2577_s26 = int_to_ptr.vmem [resolvable:$true] %s1321_s26 }
 0x2c2   : > { %v1223_v17 = vsel %vm1176_vm3, %v1202_v3, %v1214_v14  ;;  %v1224_v19 = vsel %vm1176_vm3, %v1204_v4, %v1216_v15  ;;  %s2713_s10 = sld [smem:[#allocation26_spill]]  ;;  %s2581_s11 = scalar_lea.sflag [#allocation13], %s1267_s0 }
 0x2c3   : > { %v1246_v20 = vpack.c.bf16 %v1229_v36, %v1229_v36  ;;  %v1247_v21 = vpack.c.bf16 %v1230_v13, %v1230_v13  ;;  %v1227_v22 = vmul.f32 %v1223_v17, %v2481_v34  ;;  %v1228_v23 = vmul.f32 %v1224_v19, %v2481_v34  ;;  %s1897_s15 = scalar_lea.vmem %s2569_s29, 256  ;;  %s2039_s20 = smov [#allocation12]  }
 0x2c4   : > { %p1898_p8 = scmp.ne.s32.totalorder %s2569_s29, %s1897_s15  ;;  %s1901_s23 = sshll.u32 %s2039_s20, 4  ;;  %s1902_s23 = int_to_ptr.vmem [resolvable:$false] %s1901_s23 }
 0x2c5   : > { %1250 = vst.msk [vmem:[%s501_s3] sm:$0xf] %vm1241_vm2, %v1246_v20  ;;  %1251 = vst.msk [vmem:[%s501_s3 + $0x4] sm:$0xf] %vm1241_vm2, %v1247_v21  ;;  %v1231_v25 = vadd.f32 %v1227_v22, %v1191_v16  ;;  %v1232_v24 = vadd.f32 %v1228_v23, %v1192_v18  ;;  %s1903_s24 = scalar_lea.vmem %s1902_s23, 512  ;;  %p1904_p6 = scmp.lt.s32.totalorder %s2569_s29, %s1902_s23 }
 0x2c6   : > { %p1899_p9 = pnand %p1898_p8, %p2709_p10  ;;  %p1905_p3 = scmp.lt.s32.totalorder %s1903_s24, %s1897_s15 }
 0x2c7   : > { %v1248_v26 = vpack.c.bf16 %v1231_v25, %v1231_v25  ;;  %v1249_v27 = vpack.c.bf16 %v1232_v24, %v1232_v24  ;;  %s2567_s14 = scalar_lea.hbm %s2712_s1, %s2500_s16 }
 0x2c8   : > { %s2575_s2 = scalar_lea.hbm %s2713_s10, %s2500_s16  ;;  %p1900_p4 = pneg %p1899_p9 }
 0x2c9   : > { %1252 = vst.msk [vmem:[%s501_s3 + $0x8] sm:$0xf] %vm1241_vm2, %v1248_v26  ;;  %1253 = vst.msk [vmem:[%s501_s3 + $0xc] sm:$0xf] %vm1241_vm2, %v1249_v27  ;;  %p1906_p1 = por %p1905_p3, %p1904_p6 }
 0x2cb   : > { %p1907_p12 = pnand %p1906_p1, %p1900_p4 }
 0x2cd   : > { %1910 = shalt.err (!%p1907_p12)
}
 0x2ce   : > { %s1911_s16 = scalar_lea.hbm %s2567_s14, 256  ;;  %s1915_s20 = scalar_lea.hbm %s2712_s1, 512 }
 0x2cf   : > { %p1912_p0 = scmp.ne.s32.totalorder %s2567_s14, %s1911_s16  ;;  %p1916_p11 = scmp.lt.u32.totalorder %s2567_s14, %s2712_s1 }
 0x2d0   : > { %p1917_p13 = scmp.lt.u32.totalorder %s1915_s20, %s1911_s16  ;;  %p1919_p8 = scmp.lt.u32.totalorder %s1911_s16, %s2567_s14 }
 0x2d1   : > { %p1913_p5 = pnand %p1912_p0, %p2709_p10 }
 0x2d2   : > { %p1918_p2 = por %p1917_p13, %p1916_p11 }
 0x2d3   : > { %p1914_p7 = pneg %p1913_p5 }
 0x2d4   : > { %p1920_p9 = por %p1919_p8, %p1918_p2 }
 0x2d6   : > { %p1921_p4 = pnand %p1920_p9, %p1914_p7 }
 0x2d8   : > { %1924 = shalt.err (!%p1921_p4)
}
 0x2d9   : > { %s2714_s15 = smov 64   ;;  %s1925_s28 = scalar_lea.vmem %s2577_s26, 256 }
 0x2da   : > { %1615 = dma.vmem_to_hbm [thread:$0]  (%p2709_p10), %s2569_s29, 256, %s2567_s14, %s2581_s11, %s2714_s15, %s2714_s15, %s2710_s9  }
 0x2db   : > { %p1926_p6 = scmp.ne.s32.totalorder %s2577_s26, %s1925_s28  ;;  %s2040_s24 = smov [#allocation14]  }
 0x2dc   : > { %s1929_s16 = sshll.u32 %s2040_s24, 4  ;;  %s1930_s16 = int_to_ptr.vmem [resolvable:$false] %s1929_s16 }
 0x2dd   : > { %p1927_p3 = pnand %p1926_p6, %p2709_p10  ;;  %s1931_s0 = scalar_lea.vmem %s1930_s16, 512 }
 0x2de   : > { %p1932_p12 = scmp.lt.s32.totalorder %s2577_s26, %s1930_s16  ;;  %p1933_p0 = scmp.lt.s32.totalorder %s1931_s0, %s1925_s28 }
 0x2df   : > { %p1928_p1 = pneg %p1927_p3 }
 0x2e0   : > { %p1934_p5 = por %p1933_p0, %p1932_p12 }
 0x2e2   : > { %p1935_p7 = pnand %p1934_p5, %p1928_p1 }
 0x2e4   : > { %1938 = shalt.err (!%p1935_p7)
}
 0x2e5   : > { %s1939_s29 = scalar_lea.hbm %s2575_s2, 256  ;;  %s1943_s20 = scalar_lea.hbm %s2713_s10, 512 }
 0x2e6   : > { %p1940_p11 = scmp.ne.s32.totalorder %s2575_s2, %s1939_s29  ;;  %p1944_p8 = scmp.lt.u32.totalorder %s2575_s2, %s2713_s10 }
 0x2e7   : > { %p1945_p9 = scmp.lt.u32.totalorder %s1943_s20, %s1939_s29  ;;  %p1947_p6 = scmp.lt.u32.totalorder %s1939_s29, %s2575_s2 }
 0x2e8   : > { %p1941_p13 = pnand %p1940_p11, %p2709_p10 }
 0x2e9   : > { %p1946_p4 = por %p1945_p9, %p1944_p8 }
 0x2ea   : > { %p1942_p2 = pneg %p1941_p13 }
 0x2eb   : > { %p1948_p3 = por %p1947_p6, %p1946_p4 }
 0x2ed   : > { %p1949_p1 = pnand %p1948_p3, %p1942_p2 }
 0x2ef   : > { %1952 = shalt.err (!%p1949_p1)
}
 0x2f0   : > { %1616 = dma.vmem_to_hbm [thread:$0]  (%p2709_p10), %s2577_s26, 256, %s2575_s2, %s2581_s11, %s2714_s15, %s2714_s15, %s2710_s9  }
 0x2f1 PF: > { %s1336_s28 = sand.u32 1, %s1999_s17   ;;  %p2715_p12 = scmp.ne.s32.totalorder %s2700_s13, 0 }
 0x2f2   : > { %p2716_p0 = scmp.ge.s32.totalorder %s2019_s22, 2  ;;  %s1337_s16 = scalar_lea.sflag [#allocation4], %s1336_s28 }
 0x2f4   : > { %p1638_p5 = pnand %p2716_p0, %p2715_p12 }
 0x2f6   : > { %1990 = dma.done.wait (!%p1638_p5), %s1337_s16, 256  }
 0x2f7   : > { %1992 = vsyncadd (!%p1638_p5), %s1337_s16, 4294967040  ;;  %s2717_s25 = sadd.s32 4294967294, %s2019_s22  }
 0x2f8   : > { %s1345_s0 = sand.u32 1, %s2717_s25  }
 0x2f9   : > { %s1346_s29 = scalar_lea.sflag [#allocation13], %s1345_s0 }
 0x2fa   : > { %1994 = dma.done.wait (!%p1638_p5), %s1346_s29, 512  }
 0x2fb   : > { %1996 = vsyncadd (!%p1638_p5), %s1346_s29, 4294966784  ;;  %s33_s22 = sadd.s32 1, %s2019_s22   ;;  %s2718_s17 = smov %s2003_s18 }
 0x2fc   : > { %p30_p10 = scmp.ge.s32.totalorder %s33_s22, 4   ;;  %s2719_s18 = smov %s2007_s19 }
 0x2fd   : > { %s2720_s19 = smov %s2274_s30  ;;  %s2721_s20 = smov %s2015_s21 }
 0x2fe   : > { %s2722_s21 = smov %s2724_s27  ;;  %32 = sbr.rel (!%p30_p10) target bundleno = 18 (0x12), region = 151 }
 0x305   :  { %1360 = vsyncpa [#allocation3], 1 }
 0x306   :  { %1362 = vsyncpa [#allocation3 + $0x1], 1 }
 0x307   :  { %1363 = vsyncpa [#allocation6], 1 }
 0x308   :  { %1364 = vsyncpa [#allocation9], 1 }
 0x309   :  { %1365 = vsyncpa [#allocation4], 1 }
 0x30a   :  { %1367 = vsyncpa [#allocation4 + $0x1], 1 }
 0x30b   :  { %1368 = vsyncpa [#allocation13], 1 }
 0x30c   :  { %1370 = vsyncpa [#allocation13 + $0x1], 1 }

</bundles_post_ra>
